<compile_context>
chip_gen: v6e
topology: v6e:2x2x1
jax: 0.10.0
libtpu: 0.0.40
codegen_flags: <defaults>
</compile_context>

<pallas_src>
import functools

import jax
import jax.numpy as jnp
from jax.experimental import pallas as pl
from jax.experimental.pallas import tpu as pltpu

# ----------------------------- model dimensions ------------------------------
B = 2          # batch
S = 8          # sequence length
D = 128        # args.decoder_embed_dim
H = 256        # args.base_hidden_dim
L = 2          # args.base_sublayers
NUM_WORKERS = 1
EXPERT_ID = 0
EPS = 1e-5     # fairseq LayerNorm eps

P = 3 * D + H  # packed per-sublayer params: [gamma(D), beta(D), b1(H), b2(D)]

TM_MAX = 512        # token-tile cap (sweep 256-1024; 512 ~= 85% of HBM roofline)
TOKEN_ALIGN = 16    # bf16 sublane packing: second-minor tile multiple of 16


def _round_up(a, b):
    return (a + b - 1) // b * b


def _choose_tm(t):
    """Pick the token tile: big tiles for the HBM roofline, >=2 grid steps whenever the
    input is large enough (so dimension_semantics=("parallel",) shards across both v7x
    TensorCores), and minimal tail padding (memory-bound regime: padded rows are pure
    wasted traffic)."""
    t_a = _round_up(max(t, TOKEN_ALIGN), TOKEN_ALIGN)
    if t_a <= 128:
        return t_a                                    # tiny input: one step, no extra pad
    n_tiles = max(2, -(-t_a // TM_MAX))               # >= 2 grid steps at mid/large T
    return min(TM_MAX, _round_up(-(-t_a // n_tiles), TOKEN_ALIGN))


def _vmem_budget_bytes(tm):
    """DMA-pipelined buffers + in-kernel f32 temporaries, with margin."""
    w_bytes = L * (D * H + H * D) * 2                 # bf16 ff1+ff2 weights (one copy)
    const_bytes = (D + L * P) * 4                     # centroid + packed params (f32)
    act_bytes = 2 * tm * D * 2                        # bf16 in + out token tiles (one copy)
    dma = 2 * (w_bytes + const_bytes + act_bytes)     # worst case: everything 2x buffered
    # compiler-managed temporaries: x, y, h, h2 (TMxD f32), h1 (TMxH f32, pre/post relu),
    # bf16 matmul operand copies (TMxD + TMxH).
    tmp = 4 * tm * D * 4 + 2 * tm * H * 4 + tm * (D + H) * 2
    total = dma + tmp
    return int(min(64 * 2**20, max(4 * 2**20, 2 * total)))


# --------------------------------- kernel ------------------------------------
def base_layer_kernel(num_sublayers, x_ref, cent_ref, p_ref, w1_ref, w2_ref, o_ref):
    # bf16 activation I/O; upcast once and keep all elementwise math in f32.
    x = x_ref[...].astype(jnp.float32)                 # (TM, D)
    cent = cent_ref[...].astype(jnp.float32)           # (1, D) = expert_centroids[expert_id]

    # gate: alpha = sigmoid(x . centroid)   (VPU mul + lane reduce; f32)
    affin = jnp.sum(x * cent, axis=-1, keepdims=True)  # (TM, 1)
    alpha = jax.nn.sigmoid(affin)

    inv_d = jnp.float32(1.0 / D)
    y = x
    for l in range(num_sublayers):                     # static unroll over sublayers
        gamma = p_ref[l, :, 0:D]                       # (1, D)
        beta = p_ref[l, :, D:2 * D]                    # (1, D)
        b1 = p_ref[l, :, 2 * D:2 * D + H]              # (1, H)
        b2 = p_ref[l, :, 2 * D + H:]                   # (1, D)

        # One-pass LayerNorm stats: sum(y) and sum(y*y) are independent lane
        # reductions (co-issue on XLU, overlap with MXU); var = E[y^2] - mu^2,
        # clamped at 0 against f32 cancellation.  Matches torch.nn.LayerNorm
        # (biased variance).
        mu = jnp.sum(y, axis=-1, keepdims=True) * inv_d          # (TM, 1)
        ms = jnp.sum(y * y, axis=-1, keepdims=True) * inv_d      # (TM, 1)
        var = jnp.maximum(ms - mu * mu, 0.0)
        h = (y - mu) * jax.lax.rsqrt(var + EPS) * gamma + beta   # (TM, D)

        # ff1 -> relu -> ff2: bf16 operands on the MXU, f32 accumulation
        h1 = jnp.dot(h.astype(jnp.bfloat16), w1_ref[l],
                     preferred_element_type=jnp.float32) + b1    # (TM, H)
        h1 = jnp.maximum(h1, 0.0)
        h2 = jnp.dot(h1.astype(jnp.bfloat16), w2_ref[l],
                     preferred_element_type=jnp.float32) + b2    # (TM, D)
        y = y + h2                                               # residual

    # out = alpha*y + (1-alpha)*x  ==  x + alpha*(y - x)   (one fewer multiply)
    o_ref[...] = (x + alpha * (y - x)).astype(o_ref.dtype)


# -------------------------------- wrapper -------------------------------------
def base_layer_forward(x, centroid, packed_params, w1t_bf16, w2t_bf16):
    """x: (B, S, D). Returns (B, S, D) in bfloat16 (bf16 activation I/O)."""
    feats = x.reshape(-1, D).astype(jnp.bfloat16)       # (T, D), halves HBM activation bytes
    t = feats.shape[0]

    tm = _choose_tm(t)
    t_pad = _round_up(t, tm)
    if t_pad != t:
        feats = jnp.pad(feats, ((0, t_pad - t), (0, 0)))
    grid = (t_pad // tm,)

    def call(single_buffer_consts):
        # Constant-index blocks gain nothing from double buffering; Buffered(1) halves
        # their resident VMEM (v7x headroom).  Fallback keeps the default pipeline mode.
        kw = dict(pipeline_mode=pl.Buffered(1)) if single_buffer_consts else {}
        return pl.pallas_call(
            functools.partial(base_layer_kernel, L),
            out_shape=jax.ShapeDtypeStruct((t_pad, D), jnp.bfloat16),
            grid_spec=pltpu.PrefetchScalarGridSpec(
                num_scalar_prefetch=0,
                grid=grid,
                in_specs=[
                    pl.BlockSpec((tm, D), lambda i: (i, 0)),              # tokens (tiled, bf16)
                    pl.BlockSpec((1, D), lambda i: (0, 0), **kw),         # centroid[expert_id]
                    pl.BlockSpec((L, 1, P), lambda i: (0, 0, 0), **kw),   # packed LN params+biases
                    pl.BlockSpec((L, D, H), lambda i: (0, 0, 0), **kw),   # ff1 weight.T (bf16)
                    pl.BlockSpec((L, H, D), lambda i: (0, 0, 0), **kw),   # ff2 weight.T (bf16)
                ],
                out_specs=pl.BlockSpec((tm, D), lambda i: (i, 0)),
            ),
            compiler_params=pltpu.CompilerParams(
                dimension_semantics=("parallel",),
                vmem_limit_bytes=_vmem_budget_bytes(tm)),
        )(feats, centroid, packed_params, w1t_bf16, w2t_bf16)

    try:
        out = call(True)
    except Exception:   # pipeline_mode not accepted by this JAX/libtpu build -> default buffering
        out = call(False)
    return out[:t].reshape(x.shape)


# -------------------------- pure-JAX reference --------------------------------
def base_layer_reference(x, centroid, packed_params, w1t_bf16, w2t_bf16):
    # Mirrors the kernel's bf16 input cast and bf16 matmul operands, but uses the
    # classic two-pass LayerNorm and f32 output (validates the one-pass LN form and
    # the bf16 output store against tolerance).
    feats = x.reshape(-1, D).astype(jnp.bfloat16).astype(jnp.float32)
    alpha = jax.nn.sigmoid(feats @ centroid[0])[:, None]
    y = feats
    for l in range(L):
        gamma = packed_params[l, 0, 0:D]
        beta = packed_params[l, 0, D:2 * D]
        b1 = packed_params[l, 0, 2 * D:2 * D + H]
        b2 = packed_params[l, 0, 2 * D + H:]
        mu = jnp.mean(y, axis=-1, keepdims=True)
        var = jnp.mean((y - mu) ** 2, axis=-1, keepdims=True)
        h = (y - mu) / jnp.sqrt(var + EPS) * gamma + beta
        h1 = jnp.maximum(
            jnp.dot(h.astype(jnp.bfloat16), w1t_bf16[l],
                    preferred_element_type=jnp.float32) + b1, 0.0)
        y = y + jnp.dot(h1.astype(jnp.bfloat16), w2t_bf16[l],
                        preferred_element_type=jnp.float32) + b2
    out = feats + alpha * (y - feats)
    return out.reshape(x.shape)


# --------------------------------- main ----------------------------------------
if __name__ == "__main__":
    key = jax.random.PRNGKey(0)
    k_x, k_c, k_w1, k_w2 = jax.random.split(key, 4)

    # input activations
    x = jax.random.normal(k_x, (B, S, D), dtype=jnp.float32)

    # expert_centroids: orthogonal_(gain=0.1); for a (1, D) matrix this is a
    # unit-norm row scaled by 0.1.
    c = jax.random.normal(k_c, (NUM_WORKERS, D), dtype=jnp.float32)
    expert_centroids = 0.1 * c / jnp.linalg.norm(c, axis=-1, keepdims=True)
    centroid = expert_centroids[EXPERT_ID][None, :]                 # (1, D)

    # per-sublayer parameters (nn.Linear-style uniform init, biases zero;
    # LayerNorm gamma=1, beta=0) — deterministic, stacked along sublayer axis.
    bound1 = 1.0 / jnp.sqrt(jnp.float32(D))
    bound2 = 1.0 / jnp.sqrt(jnp.float32(H))
    w1t = jax.random.uniform(k_w1, (L, D, H), jnp.float32, -bound1, bound1)  # ff1.weight.T
    w2t = jax.random.uniform(k_w2, (L, H, D), jnp.float32, -bound2, bound2)  # ff2.weight.T
    b1 = jnp.zeros((L, 1, H), jnp.float32)
    b2 = jnp.zeros((L, 1, D), jnp.float32)
    ln_g = jnp.ones((L, 1, D), jnp.float32)
    ln_b = jnp.zeros((L, 1, D), jnp.float32)

    # Pack [gamma, beta, b1, b2] along the lane axis -> one small f32 input.
    packed_params = jnp.concatenate([ln_g, ln_b, b1, b2], axis=-1)  # (L, 1, 3D+H)

    # Weights cast once to bf16 (MXU-native; halves weight DMA bytes).
    w1t_bf16 = w1t.astype(jnp.bfloat16)
    w2t_bf16 = w2t.astype(jnp.bfloat16)

    # TODO(synk): All2All (torch.distributed.all_to_all_single), base_shuffle randperm
    # and libbase.balanced_assignment are distributed routing glue; with a single
    # worker in inference mode they are identities and are intentionally elided.

    out = base_layer_forward(x, centroid, packed_params, w1t_bf16, w2t_bf16)
    out = jax.block_until_ready(out)

    ref = base_layer_reference(x, centroid, packed_params, w1t_bf16, w2t_bf16)
    assert out.shape == x.shape
    assert jnp.allclose(out.astype(jnp.float32), ref, atol=3e-2, rtol=3e-2), \
        "mismatch vs JAX reference"

    print("KERNEL_OK")
</pallas_src>

<mosaic_0001>
module attributes {stable_mosaic.version = 11 : i64} {
  func.func @base_layer_kernel(%arg0: i32, %arg1: memref<16x128xbf16, #tpu.memory_space<vmem>>, %arg2: memref<1x128xf32, #tpu.memory_space<vmem>>, %arg3: memref<2x1x640xf32, #tpu.memory_space<vmem>>, %arg4: memref<2x128x256xbf16, #tpu.memory_space<vmem>>, %arg5: memref<2x256x128xbf16, #tpu.memory_space<vmem>>, %arg6: memref<16x128xbf16, #tpu.memory_space<vmem>>) attributes {dimension_semantics = [#tpu.dimension_semantics<parallel>], iteration_bounds = array<i64: 1>, scalar_prefetch = 0 : i64, scratch_operands = 0 : i64, tpu.core_type = #tpu.core_type<tc>, window_params = [{transform_indices = @transform_0, window_bounds = array<i64: 16, 128>}, {pipeline_mode = #tpu.pipeline_mode<synchronous>, transform_indices = @transform_1, window_bounds = array<i64: 1, 128>}, {pipeline_mode = #tpu.pipeline_mode<synchronous>, transform_indices = @transform_2, window_bounds = array<i64: 2, 1, 640>}, {pipeline_mode = #tpu.pipeline_mode<synchronous>, transform_indices = @transform_3, window_bounds = array<i64: 2, 128, 256>}, {pipeline_mode = #tpu.pipeline_mode<synchronous>, transform_indices = @transform_4, window_bounds = array<i64: 2, 256, 128>}, {transform_indices = @transform_5, window_bounds = array<i64: 16, 128>}]} {
    %c0 = arith.constant 0 : index
    %c0_0 = arith.constant 0 : index
    %0 = vector.load %arg1[%c0, %c0_0] : memref<16x128xbf16, #tpu.memory_space<vmem>>, vector<16x128xbf16>
    %1 = arith.extf %0 : vector<16x128xbf16> to vector<16x128xf32>
    %c0_1 = arith.constant 0 : index
    %c0_2 = arith.constant 0 : index
    %2 = vector.load %arg2[%c0_1, %c0_2] : memref<1x128xf32, #tpu.memory_space<vmem>>, vector<1x128xf32>
    %3 = vector.broadcast %2 : vector<1x128xf32> to vector<16x128xf32>
    %4 = arith.mulf %1, %3 : vector<16x128xf32>
    %cst = arith.constant dense<0.000000e+00> : vector<16xf32>
    %5 = vector.multi_reduction <add>, %4, %cst [1] : vector<16x128xf32> to vector<16xf32>
    %6 = vector.shape_cast %5 : vector<16xf32> to vector<16x1xf32>
    %7 = arith.negf %6 : vector<16x1xf32>
    %8 = math.exp %7 : vector<16x1xf32>
    %cst_3 = arith.constant 1.000000e+00 : f32
    %9 = vector.broadcast %cst_3 : f32 to vector<16x1xf32>
    %10 = arith.addf %9, %8 : vector<16x1xf32>
    %11 = arith.divf %9, %10 : vector<16x1xf32>
    %c0_4 = arith.constant 0 : index
    %c0_5 = arith.constant 0 : index
    %c0_6 = arith.constant 0 : index
    %12 = vector.load %arg3[%c0_4, %c0_5, %c0_6] : memref<2x1x640xf32, #tpu.memory_space<vmem>>, vector<1x1x128xf32>
    %13 = vector.shape_cast %12 : vector<1x1x128xf32> to vector<1x128xf32>
    %c0_7 = arith.constant 0 : index
    %c0_8 = arith.constant 0 : index
    %c128 = arith.constant 128 : index
    %14 = vector.load %arg3[%c0_7, %c0_8, %c128] : memref<2x1x640xf32, #tpu.memory_space<vmem>>, vector<1x1x128xf32>
    %15 = vector.shape_cast %14 : vector<1x1x128xf32> to vector<1x128xf32>
    %c0_9 = arith.constant 0 : index
    %c0_10 = arith.constant 0 : index
    %c256 = arith.constant 256 : index
    %16 = vector.load %arg3[%c0_9, %c0_10, %c256] : memref<2x1x640xf32, #tpu.memory_space<vmem>>, vector<1x1x256xf32>
    %17 = vector.shape_cast %16 : vector<1x1x256xf32> to vector<1x256xf32>
    %c0_11 = arith.constant 0 : index
    %c0_12 = arith.constant 0 : index
    %c512 = arith.constant 512 : index
    %18 = vector.load %arg3[%c0_11, %c0_12, %c512] : memref<2x1x640xf32, #tpu.memory_space<vmem>>, vector<1x1x128xf32>
    %19 = vector.shape_cast %18 : vector<1x1x128xf32> to vector<1x128xf32>
    %cst_13 = arith.constant dense<0.000000e+00> : vector<16xf32>
    %20 = vector.multi_reduction <add>, %1, %cst_13 [1] : vector<16x128xf32> to vector<16xf32>
    %21 = vector.shape_cast %20 : vector<16xf32> to vector<16x1xf32>
    %cst_14 = arith.constant 7.812500e-03 : f32
    %22 = vector.broadcast %cst_14 : f32 to vector<16x1xf32>
    %23 = arith.mulf %21, %22 : vector<16x1xf32>
    %24 = arith.mulf %1, %1 : vector<16x128xf32>
    %cst_15 = arith.constant dense<0.000000e+00> : vector<16xf32>
    %25 = vector.multi_reduction <add>, %24, %cst_15 [1] : vector<16x128xf32> to vector<16xf32>
    %26 = vector.shape_cast %25 : vector<16xf32> to vector<16x1xf32>
    %cst_16 = arith.constant 7.812500e-03 : f32
    %27 = vector.broadcast %cst_16 : f32 to vector<16x1xf32>
    %28 = arith.mulf %26, %27 : vector<16x1xf32>
    %29 = arith.mulf %23, %23 : vector<16x1xf32>
    %30 = arith.subf %28, %29 : vector<16x1xf32>
    %cst_17 = arith.constant 0.000000e+00 : f32
    %31 = vector.broadcast %cst_17 : f32 to vector<16x1xf32>
    %32 = arith.maximumf %30, %31 : vector<16x1xf32>
    %33 = vector.broadcast %23 : vector<16x1xf32> to vector<16x128xf32>
    %34 = arith.subf %1, %33 : vector<16x128xf32>
    %cst_18 = arith.constant 9.99999974E-6 : f32
    %35 = vector.broadcast %cst_18 : f32 to vector<16x1xf32>
    %36 = arith.addf %32, %35 : vector<16x1xf32>
    %37 = math.rsqrt %36 : vector<16x1xf32>
    %38 = vector.broadcast %37 : vector<16x1xf32> to vector<16x128xf32>
    %39 = arith.mulf %34, %38 : vector<16x128xf32>
    %40 = vector.broadcast %13 : vector<1x128xf32> to vector<16x128xf32>
    %41 = arith.mulf %39, %40 : vector<16x128xf32>
    %42 = vector.broadcast %15 : vector<1x128xf32> to vector<16x128xf32>
    %43 = arith.addf %41, %42 : vector<16x128xf32>
    %44 = arith.truncf %43 : vector<16x128xf32> to vector<16x128xbf16>
    %c0_19 = arith.constant 0 : index
    %c0_20 = arith.constant 0 : index
    %c0_21 = arith.constant 0 : index
    %45 = vector.load %arg4[%c0_19, %c0_20, %c0_21] : memref<2x128x256xbf16, #tpu.memory_space<vmem>>, vector<1x128x256xbf16>
    %46 = vector.shape_cast %45 : vector<1x128x256xbf16> to vector<128x256xbf16>
    %cst_22 = arith.constant dense<0.000000e+00> : vector<16x256xf32>
    %47 = tpu.matmul %44, %46, %cst_22 {dimension_numbers = #tpu.dot_dimension_numbers<[1], [0], [0], [1], [0, 0, 1, 1], [], []>} : vector<16x128xbf16>, vector<128x256xbf16>, vector<16x256xf32> -> vector<16x256xf32>
    %48 = vector.broadcast %17 : vector<1x256xf32> to vector<16x256xf32>
    %49 = arith.addf %47, %48 : vector<16x256xf32>
    %cst_23 = arith.constant 0.000000e+00 : f32
    %50 = vector.broadcast %cst_23 : f32 to vector<16x256xf32>
    %51 = arith.maximumf %49, %50 : vector<16x256xf32>
    %52 = arith.truncf %51 : vector<16x256xf32> to vector<16x256xbf16>
    %c0_24 = arith.constant 0 : index
    %c0_25 = arith.constant 0 : index
    %c0_26 = arith.constant 0 : index
    %53 = vector.load %arg5[%c0_24, %c0_25, %c0_26] : memref<2x256x128xbf16, #tpu.memory_space<vmem>>, vector<1x256x128xbf16>
    %54 = vector.shape_cast %53 : vector<1x256x128xbf16> to vector<256x128xbf16>
    %cst_27 = arith.constant dense<0.000000e+00> : vector<16x128xf32>
    %55 = tpu.matmul %52, %54, %cst_27 {dimension_numbers = #tpu.dot_dimension_numbers<[1], [0], [0], [1], [0, 0, 1, 1], [], []>} : vector<16x256xbf16>, vector<256x128xbf16>, vector<16x128xf32> -> vector<16x128xf32>
    %56 = vector.broadcast %19 : vector<1x128xf32> to vector<16x128xf32>
    %57 = arith.addf %55, %56 : vector<16x128xf32>
    %58 = arith.addf %1, %57 : vector<16x128xf32>
    %c1 = arith.constant 1 : index
    %c0_28 = arith.constant 0 : index
    %c0_29 = arith.constant 0 : index
    %59 = vector.load %arg3[%c1, %c0_28, %c0_29] : memref<2x1x640xf32, #tpu.memory_space<vmem>>, vector<1x1x128xf32>
    %60 = vector.shape_cast %59 : vector<1x1x128xf32> to vector<1x128xf32>
    %c1_30 = arith.constant 1 : index
    %c0_31 = arith.constant 0 : index
    %c128_32 = arith.constant 128 : index
    %61 = vector.load %arg3[%c1_30, %c0_31, %c128_32] : memref<2x1x640xf32, #tpu.memory_space<vmem>>, vector<1x1x128xf32>
    %62 = vector.shape_cast %61 : vector<1x1x128xf32> to vector<1x128xf32>
    %c1_33 = arith.constant 1 : index
    %c0_34 = arith.constant 0 : index
    %c256_35 = arith.constant 256 : index
    %63 = vector.load %arg3[%c1_33, %c0_34, %c256_35] : memref<2x1x640xf32, #tpu.memory_space<vmem>>, vector<1x1x256xf32>
    %64 = vector.shape_cast %63 : vector<1x1x256xf32> to vector<1x256xf32>
    %c1_36 = arith.constant 1 : index
    %c0_37 = arith.constant 0 : index
    %c512_38 = arith.constant 512 : index
    %65 = vector.load %arg3[%c1_36, %c0_37, %c512_38] : memref<2x1x640xf32, #tpu.memory_space<vmem>>, vector<1x1x128xf32>
    %66 = vector.shape_cast %65 : vector<1x1x128xf32> to vector<1x128xf32>
    %cst_39 = arith.constant dense<0.000000e+00> : vector<16xf32>
    %67 = vector.multi_reduction <add>, %58, %cst_39 [1] : vector<16x128xf32> to vector<16xf32>
    %68 = vector.shape_cast %67 : vector<16xf32> to vector<16x1xf32>
    %cst_40 = arith.constant 7.812500e-03 : f32
    %69 = vector.broadcast %cst_40 : f32 to vector<16x1xf32>
    %70 = arith.mulf %68, %69 : vector<16x1xf32>
    %71 = arith.mulf %58, %58 : vector<16x128xf32>
    %cst_41 = arith.constant dense<0.000000e+00> : vector<16xf32>
    %72 = vector.multi_reduction <add>, %71, %cst_41 [1] : vector<16x128xf32> to vector<16xf32>
    %73 = vector.shape_cast %72 : vector<16xf32> to vector<16x1xf32>
    %cst_42 = arith.constant 7.812500e-03 : f32
    %74 = vector.broadcast %cst_42 : f32 to vector<16x1xf32>
    %75 = arith.mulf %73, %74 : vector<16x1xf32>
    %76 = arith.mulf %70, %70 : vector<16x1xf32>
    %77 = arith.subf %75, %76 : vector<16x1xf32>
    %cst_43 = arith.constant 0.000000e+00 : f32
    %78 = vector.broadcast %cst_43 : f32 to vector<16x1xf32>
    %79 = arith.maximumf %77, %78 : vector<16x1xf32>
    %80 = vector.broadcast %70 : vector<16x1xf32> to vector<16x128xf32>
    %81 = arith.subf %58, %80 : vector<16x128xf32>
    %cst_44 = arith.constant 9.99999974E-6 : f32
    %82 = vector.broadcast %cst_44 : f32 to vector<16x1xf32>
    %83 = arith.addf %79, %82 : vector<16x1xf32>
    %84 = math.rsqrt %83 : vector<16x1xf32>
    %85 = vector.broadcast %84 : vector<16x1xf32> to vector<16x128xf32>
    %86 = arith.mulf %81, %85 : vector<16x128xf32>
    %87 = vector.broadcast %60 : vector<1x128xf32> to vector<16x128xf32>
    %88 = arith.mulf %86, %87 : vector<16x128xf32>
    %89 = vector.broadcast %62 : vector<1x128xf32> to vector<16x128xf32>
    %90 = arith.addf %88, %89 : vector<16x128xf32>
    %91 = arith.truncf %90 : vector<16x128xf32> to vector<16x128xbf16>
    %c1_45 = arith.constant 1 : index
    %c0_46 = arith.constant 0 : index
    %c0_47 = arith.constant 0 : index
    %92 = vector.load %arg4[%c1_45, %c0_46, %c0_47] : memref<2x128x256xbf16, #tpu.memory_space<vmem>>, vector<1x128x256xbf16>
    %93 = vector.shape_cast %92 : vector<1x128x256xbf16> to vector<128x256xbf16>
    %cst_48 = arith.constant dense<0.000000e+00> : vector<16x256xf32>
    %94 = tpu.matmul %91, %93, %cst_48 {dimension_numbers = #tpu.dot_dimension_numbers<[1], [0], [0], [1], [0, 0, 1, 1], [], []>} : vector<16x128xbf16>, vector<128x256xbf16>, vector<16x256xf32> -> vector<16x256xf32>
    %95 = vector.broadcast %64 : vector<1x256xf32> to vector<16x256xf32>
    %96 = arith.addf %94, %95 : vector<16x256xf32>
    %cst_49 = arith.constant 0.000000e+00 : f32
    %97 = vector.broadcast %cst_49 : f32 to vector<16x256xf32>
    %98 = arith.maximumf %96, %97 : vector<16x256xf32>
    %99 = arith.truncf %98 : vector<16x256xf32> to vector<16x256xbf16>
    %c1_50 = arith.constant 1 : index
    %c0_51 = arith.constant 0 : index
    %c0_52 = arith.constant 0 : index
    %100 = vector.load %arg5[%c1_50, %c0_51, %c0_52] : memref<2x256x128xbf16, #tpu.memory_space<vmem>>, vector<1x256x128xbf16>
    %101 = vector.shape_cast %100 : vector<1x256x128xbf16> to vector<256x128xbf16>
    %cst_53 = arith.constant dense<0.000000e+00> : vector<16x128xf32>
    %102 = tpu.matmul %99, %101, %cst_53 {dimension_numbers = #tpu.dot_dimension_numbers<[1], [0], [0], [1], [0, 0, 1, 1], [], []>} : vector<16x256xbf16>, vector<256x128xbf16>, vector<16x128xf32> -> vector<16x128xf32>
    %103 = vector.broadcast %66 : vector<1x128xf32> to vector<16x128xf32>
    %104 = arith.addf %102, %103 : vector<16x128xf32>
    %105 = arith.addf %58, %104 : vector<16x128xf32>
    %106 = arith.subf %105, %1 : vector<16x128xf32>
    %107 = vector.broadcast %11 : vector<16x1xf32> to vector<16x128xf32>
    %108 = arith.mulf %107, %106 : vector<16x128xf32>
    %109 = arith.addf %1, %108 : vector<16x128xf32>
    %110 = arith.truncf %109 : vector<16x128xf32> to vector<16x128xbf16>
    %c0_54 = arith.constant 0 : index
    %c0_55 = arith.constant 0 : index
    %111 = vector.load %arg6[%c0_54, %c0_55] : memref<16x128xbf16, #tpu.memory_space<vmem>>, vector<16x128xbf16>
    tpu.vector_store %arg6[%c0_54, %c0_55], %110 {strides = array<i32>} : memref<16x128xbf16, #tpu.memory_space<vmem>>, vector<16x128xbf16>,
    return
  }
  func.func @transform_0(%arg0: i32) -> (i32, i32) {
    %c0_i32 = arith.constant 0 : i32
    %c0_i32_0 = arith.constant 0 : i32
    return %arg0, %c0_i32 : i32, i32
  }
  func.func @transform_1(%arg0: i32) -> (i32, i32) {
    %c0_i32 = arith.constant 0 : i32
    %c0_i32_0 = arith.constant 0 : i32
    %c0_i32_1 = arith.constant 0 : i32
    return %c0_i32, %c0_i32_0 : i32, i32
  }
  func.func @transform_2(%arg0: i32) -> (i32, i32, i32) {
    %c0_i32 = arith.constant 0 : i32
    %c0_i32_0 = arith.constant 0 : i32
    %c0_i32_1 = arith.constant 0 : i32
    %c0_i32_2 = arith.constant 0 : i32
    return %c0_i32, %c0_i32_0, %c0_i32_1 : i32, i32, i32
  }
  func.func @transform_3(%arg0: i32) -> (i32, i32, i32) {
    %c0_i32 = arith.constant 0 : i32
    %c0_i32_0 = arith.constant 0 : i32
    %c0_i32_1 = arith.constant 0 : i32
    %c0_i32_2 = arith.constant 0 : i32
    return %c0_i32, %c0_i32_0, %c0_i32_1 : i32, i32, i32
  }
  func.func @transform_4(%arg0: i32) -> (i32, i32, i32) {
    %c0_i32 = arith.constant 0 : i32
    %c0_i32_0 = arith.constant 0 : i32
    %c0_i32_1 = arith.constant 0 : i32
    %c0_i32_2 = arith.constant 0 : i32
    return %c0_i32, %c0_i32_0, %c0_i32_1 : i32, i32, i32
  }
  func.func @transform_5(%arg0: i32) -> (i32, i32) {
    %c0_i32 = arith.constant 0 : i32
    %c0_i32_0 = arith.constant 0 : i32
    return %arg0, %c0_i32 : i32, i32
  }
}

module attributes {stable_mosaic.version = 11 : i64} {
  func.func @base_layer_kernel(%arg0: i32, %arg1: memref<16x128xbf16, #tpu.memory_space<vmem>>, %arg2: memref<1x128xf32, #tpu.memory_space<vmem>>, %arg3: memref<2x1x640xf32, #tpu.memory_space<vmem>>, %arg4: memref<2x128x256xbf16, #tpu.memory_space<vmem>>, %arg5: memref<2x256x128xbf16, #tpu.memory_space<vmem>>, %arg6: memref<16x128xbf16, #tpu.memory_space<vmem>>) attributes {dimension_semantics = [#tpu.dimension_semantics<parallel>], iteration_bounds = array<i64: 1>, scalar_prefetch = 0 : i64, scratch_operands = 0 : i64, tpu.core_type = #tpu.core_type<tc>, window_params = [{transform_indices = @transform_0, window_bounds = array<i64: 16, 128>}, {pipeline_mode = #tpu.pipeline_mode<synchronous>, transform_indices = @transform_1, window_bounds = array<i64: 1, 128>}, {pipeline_mode = #tpu.pipeline_mode<synchronous>, transform_indices = @transform_2, window_bounds = array<i64: 2, 1, 640>}, {pipeline_mode = #tpu.pipeline_mode<synchronous>, transform_indices = @transform_3, window_bounds = array<i64: 2, 128, 256>}, {pipeline_mode = #tpu.pipeline_mode<synchronous>, transform_indices = @transform_4, window_bounds = array<i64: 2, 256, 128>}, {transform_indices = @transform_5, window_bounds = array<i64: 16, 128>}]} {
    %c0 = arith.constant 0 : index
    %c0_0 = arith.constant 0 : index
    %0 = vector.load %arg1[%c0, %c0_0] : memref<16x128xbf16, #tpu.memory_space<vmem>>, vector<16x128xbf16>
    %1 = arith.extf %0 : vector<16x128xbf16> to vector<16x128xf32>
    %c0_1 = arith.constant 0 : index
    %c0_2 = arith.constant 0 : index
    %2 = vector.load %arg2[%c0_1, %c0_2] : memref<1x128xf32, #tpu.memory_space<vmem>>, vector<1x128xf32>
    %3 = vector.broadcast %2 : vector<1x128xf32> to vector<16x128xf32>
    %4 = arith.mulf %1, %3 : vector<16x128xf32>
    %cst = arith.constant dense<0.000000e+00> : vector<16xf32>
    %5 = vector.multi_reduction <add>, %4, %cst [1] : vector<16x128xf32> to vector<16xf32>
    %6 = vector.shape_cast %5 : vector<16xf32> to vector<16x1xf32>
    %7 = arith.negf %6 : vector<16x1xf32>
    %8 = math.exp %7 : vector<16x1xf32>
    %cst_3 = arith.constant 1.000000e+00 : f32
    %9 = vector.broadcast %cst_3 : f32 to vector<16x1xf32>
    %10 = arith.addf %9, %8 : vector<16x1xf32>
    %11 = arith.divf %9, %10 : vector<16x1xf32>
    %c0_4 = arith.constant 0 : index
    %c0_5 = arith.constant 0 : index
    %c0_6 = arith.constant 0 : index
    %12 = vector.load %arg3[%c0_4, %c0_5, %c0_6] : memref<2x1x640xf32, #tpu.memory_space<vmem>>, vector<1x1x128xf32>
    %13 = vector.shape_cast %12 : vector<1x1x128xf32> to vector<1x128xf32>
    %c0_7 = arith.constant 0 : index
    %c0_8 = arith.constant 0 : index
    %c128 = arith.constant 128 : index
    %14 = vector.load %arg3[%c0_7, %c0_8, %c128] : memref<2x1x640xf32, #tpu.memory_space<vmem>>, vector<1x1x128xf32>
    %15 = vector.shape_cast %14 : vector<1x1x128xf32> to vector<1x128xf32>
    %c0_9 = arith.constant 0 : index
    %c0_10 = arith.constant 0 : index
    %c256 = arith.constant 256 : index
    %16 = vector.load %arg3[%c0_9, %c0_10, %c256] : memref<2x1x640xf32, #tpu.memory_space<vmem>>, vector<1x1x256xf32>
    %17 = vector.shape_cast %16 : vector<1x1x256xf32> to vector<1x256xf32>
    %c0_11 = arith.constant 0 : index
    %c0_12 = arith.constant 0 : index
    %c512 = arith.constant 512 : index
    %18 = vector.load %arg3[%c0_11, %c0_12, %c512] : memref<2x1x640xf32, #tpu.memory_space<vmem>>, vector<1x1x128xf32>
    %19 = vector.shape_cast %18 : vector<1x1x128xf32> to vector<1x128xf32>
    %cst_13 = arith.constant dense<0.000000e+00> : vector<16xf32>
    %20 = vector.multi_reduction <add>, %1, %cst_13 [1] : vector<16x128xf32> to vector<16xf32>
    %21 = vector.shape_cast %20 : vector<16xf32> to vector<16x1xf32>
    %cst_14 = arith.constant 7.812500e-03 : f32
    %22 = vector.broadcast %cst_14 : f32 to vector<16x1xf32>
    %23 = arith.mulf %21, %22 : vector<16x1xf32>
    %24 = arith.mulf %1, %1 : vector<16x128xf32>
    %cst_15 = arith.constant dense<0.000000e+00> : vector<16xf32>
    %25 = vector.multi_reduction <add>, %24, %cst_15 [1] : vector<16x128xf32> to vector<16xf32>
    %26 = vector.shape_cast %25 : vector<16xf32> to vector<16x1xf32>
    %cst_16 = arith.constant 7.812500e-03 : f32
    %27 = vector.broadcast %cst_16 : f32 to vector<16x1xf32>
    %28 = arith.mulf %26, %27 : vector<16x1xf32>
    %29 = arith.mulf %23, %23 : vector<16x1xf32>
    %30 = arith.subf %28, %29 : vector<16x1xf32>
    %cst_17 = arith.constant 0.000000e+00 : f32
    %31 = vector.broadcast %cst_17 : f32 to vector<16x1xf32>
    %32 = arith.maximumf %30, %31 : vector<16x1xf32>
    %33 = vector.broadcast %23 : vector<16x1xf32> to vector<16x128xf32>
    %34 = arith.subf %1, %33 : vector<16x128xf32>
    %cst_18 = arith.constant 9.99999974E-6 : f32
    %35 = vector.broadcast %cst_18 : f32 to vector<16x1xf32>
    %36 = arith.addf %32, %35 : vector<16x1xf32>
    %37 = math.rsqrt %36 : vector<16x1xf32>
    %38 = vector.broadcast %37 : vector<16x1xf32> to vector<16x128xf32>
    %39 = arith.mulf %34, %38 : vector<16x128xf32>
    %40 = vector.broadcast %13 : vector<1x128xf32> to vector<16x128xf32>
    %41 = arith.mulf %39, %40 : vector<16x128xf32>
    %42 = vector.broadcast %15 : vector<1x128xf32> to vector<16x128xf32>
    %43 = arith.addf %41, %42 : vector<16x128xf32>
    %44 = arith.truncf %43 : vector<16x128xf32> to vector<16x128xbf16>
    %c0_19 = arith.constant 0 : index
    %c0_20 = arith.constant 0 : index
    %c0_21 = arith.constant 0 : index
    %45 = vector.load %arg4[%c0_19, %c0_20, %c0_21] : memref<2x128x256xbf16, #tpu.memory_space<vmem>>, vector<1x128x256xbf16>
    %46 = vector.shape_cast %45 : vector<1x128x256xbf16> to vector<128x256xbf16>
    %cst_22 = arith.constant dense<0.000000e+00> : vector<16x256xf32>
    %47 = tpu.matmul %44, %46, %cst_22 {dimension_numbers = #tpu.dot_dimension_numbers<[1], [0], [0], [1], [0, 0, 1, 1], [], []>} : vector<16x128xbf16>, vector<128x256xbf16>, vector<16x256xf32> -> vector<16x256xf32>
    %48 = vector.broadcast %17 : vector<1x256xf32> to vector<16x256xf32>
    %49 = arith.addf %47, %48 : vector<16x256xf32>
    %cst_23 = arith.constant 0.000000e+00 : f32
    %50 = vector.broadcast %cst_23 : f32 to vector<16x256xf32>
    %51 = arith.maximumf %49, %50 : vector<16x256xf32>
    %52 = arith.truncf %51 : vector<16x256xf32> to vector<16x256xbf16>
    %c0_24 = arith.constant 0 : index
    %c0_25 = arith.constant 0 : index
    %c0_26 = arith.constant 0 : index
    %53 = vector.load %arg5[%c0_24, %c0_25, %c0_26] : memref<2x256x128xbf16, #tpu.memory_space<vmem>>, vector<1x256x128xbf16>
    %54 = vector.shape_cast %53 : vector<1x256x128xbf16> to vector<256x128xbf16>
    %cst_27 = arith.constant dense<0.000000e+00> : vector<16x128xf32>
    %55 = tpu.matmul %52, %54, %cst_27 {dimension_numbers = #tpu.dot_dimension_numbers<[1], [0], [0], [1], [0, 0, 1, 1], [], []>} : vector<16x256xbf16>, vector<256x128xbf16>, vector<16x128xf32> -> vector<16x128xf32>
    %56 = vector.broadcast %19 : vector<1x128xf32> to vector<16x128xf32>
    %57 = arith.addf %55, %56 : vector<16x128xf32>
    %58 = arith.addf %1, %57 : vector<16x128xf32>
    %c1 = arith.constant 1 : index
    %c0_28 = arith.constant 0 : index
    %c0_29 = arith.constant 0 : index
    %59 = vector.load %arg3[%c1, %c0_28, %c0_29] : memref<2x1x640xf32, #tpu.memory_space<vmem>>, vector<1x1x128xf32>
    %60 = vector.shape_cast %59 : vector<1x1x128xf32> to vector<1x128xf32>
    %c1_30 = arith.constant 1 : index
    %c0_31 = arith.constant 0 : index
    %c128_32 = arith.constant 128 : index
    %61 = vector.load %arg3[%c1_30, %c0_31, %c128_32] : memref<2x1x640xf32, #tpu.memory_space<vmem>>, vector<1x1x128xf32>
    %62 = vector.shape_cast %61 : vector<1x1x128xf32> to vector<1x128xf32>
    %c1_33 = arith.constant 1 : index
    %c0_34 = arith.constant 0 : index
    %c256_35 = arith.constant 256 : index
    %63 = vector.load %arg3[%c1_33, %c0_34, %c256_35] : memref<2x1x640xf32, #tpu.memory_space<vmem>>, vector<1x1x256xf32>
    %64 = vector.shape_cast %63 : vector<1x1x256xf32> to vector<1x256xf32>
    %c1_36 = arith.constant 1 : index
    %c0_37 = arith.constant 0 : index
    %c512_38 = arith.constant 512 : index
    %65 = vector.load %arg3[%c1_36, %c0_37, %c512_38] : memref<2x1x640xf32, #tpu.memory_space<vmem>>, vector<1x1x128xf32>
    %66 = vector.shape_cast %65 : vector<1x1x128xf32> to vector<1x128xf32>
    %cst_39 = arith.constant dense<0.000000e+00> : vector<16xf32>
    %67 = vector.multi_reduction <add>, %58, %cst_39 [1] : vector<16x128xf32> to vector<16xf32>
    %68 = vector.shape_cast %67 : vector<16xf32> to vector<16x1xf32>
    %cst_40 = arith.constant 7.812500e-03 : f32
    %69 = vector.broadcast %cst_40 : f32 to vector<16x1xf32>
    %70 = arith.mulf %68, %69 : vector<16x1xf32>
    %71 = arith.mulf %58, %58 : vector<16x128xf32>
    %cst_41 = arith.constant dense<0.000000e+00> : vector<16xf32>
    %72 = vector.multi_reduction <add>, %71, %cst_41 [1] : vector<16x128xf32> to vector<16xf32>
    %73 = vector.shape_cast %72 : vector<16xf32> to vector<16x1xf32>
    %cst_42 = arith.constant 7.812500e-03 : f32
    %74 = vector.broadcast %cst_42 : f32 to vector<16x1xf32>
    %75 = arith.mulf %73, %74 : vector<16x1xf32>
    %76 = arith.mulf %70, %70 : vector<16x1xf32>
    %77 = arith.subf %75, %76 : vector<16x1xf32>
    %cst_43 = arith.constant 0.000000e+00 : f32
    %78 = vector.broadcast %cst_43 : f32 to vector<16x1xf32>
    %79 = arith.maximumf %77, %78 : vector<16x1xf32>
    %80 = vector.broadcast %70 : vector<16x1xf32> to vector<16x128xf32>
    %81 = arith.subf %58, %80 : vector<16x128xf32>
    %cst_44 = arith.constant 9.99999974E-6 : f32
    %82 = vector.broadcast %cst_44 : f32 to vector<16x1xf32>
    %83 = arith.addf %79, %82 : vector<16x1xf32>
    %84 = math.rsqrt %83 : vector<16x1xf32>
    %85 = vector.broadcast %84 : vector<16x1xf32> to vector<16x128xf32>
    %86 = arith.mulf %81, %85 : vector<16x128xf32>
    %87 = vector.broadcast %60 : vector<1x128xf32> to vector<16x128xf32>
    %88 = arith.mulf %86, %87 : vector<16x128xf32>
    %89 = vector.broadcast %62 : vector<1x128xf32> to vector<16x128xf32>
    %90 = arith.addf %88, %89 : vector<16x128xf32>
    %91 = arith.truncf %90 : vector<16x128xf32> to vector<16x128xbf16>
    %c1_45 = arith.constant 1 : index
    %c0_46 = arith.constant 0 : index
    %c0_47 = arith.constant 0 : index
    %92 = vector.load %arg4[%c1_45, %c0_46, %c0_47] : memref<2x128x256xbf16, #tpu.memory_space<vmem>>, vector<1x128x256xbf16>
    %93 = vector.shape_cast %92 : vector<1x128x256xbf16> to vector<128x256xbf16>
    %cst_48 = arith.constant dense<0.000000e+00> : vector<16x256xf32>
    %94 = tpu.matmul %91, %93, %cst_48 {dimension_numbers = #tpu.dot_dimension_numbers<[1], [0], [0], [1], [0, 0, 1, 1], [], []>} : vector<16x128xbf16>, vector<128x256xbf16>, vector<16x256xf32> -> vector<16x256xf32>
    %95 = vector.broadcast %64 : vector<1x256xf32> to vector<16x256xf32>
    %96 = arith.addf %94, %95 : vector<16x256xf32>
    %cst_49 = arith.constant 0.000000e+00 : f32
    %97 = vector.broadcast %cst_49 : f32 to vector<16x256xf32>
    %98 = arith.maximumf %96, %97 : vector<16x256xf32>
    %99 = arith.truncf %98 : vector<16x256xf32> to vector<16x256xbf16>
    %c1_50 = arith.constant 1 : index
    %c0_51 = arith.constant 0 : index
    %c0_52 = arith.constant 0 : index
    %100 = vector.load %arg5[%c1_50, %c0_51, %c0_52] : memref<2x256x128xbf16, #tpu.memory_space<vmem>>, vector<1x256x128xbf16>
    %101 = vector.shape_cast %100 : vector<1x256x128xbf16> to vector<256x128xbf16>
    %cst_53 = arith.constant dense<0.000000e+00> : vector<16x128xf32>
    %102 = tpu.matmul %99, %101, %cst_53 {dimension_numbers = #tpu.dot_dimension_numbers<[1], [0], [0], [1], [0, 0, 1, 1], [], []>} : vector<16x256xbf16>, vector<256x128xbf16>, vector<16x128xf32> -> vector<16x128xf32>
    %103 = vector.broadcast %66 : vector<1x128xf32> to vector<16x128xf32>
    %104 = arith.addf %102, %103 : vector<16x128xf32>
    %105 = arith.addf %58, %104 : vector<16x128xf32>
    %106 = arith.subf %105, %1 : vector<16x128xf32>
    %107 = vector.broadcast %11 : vector<16x1xf32> to vector<16x128xf32>
    %108 = arith.mulf %107, %106 : vector<16x128xf32>
    %109 = arith.addf %1, %108 : vector<16x128xf32>
    %110 = arith.truncf %109 : vector<16x128xf32> to vector<16x128xbf16>
    %c0_54 = arith.constant 0 : index
    %c0_55 = arith.constant 0 : index
    %111 = vector.load %arg6[%c0_54, %c0_55] : memref<16x128xbf16, #tpu.memory_space<vmem>>, vector<16x128xbf16>
    tpu.vector_store %arg6[%c0_54, %c0_55], %110 {strides = array<i32>} : memref<16x128xbf16, #tpu.memory_space<vmem>>, vector<16x128xbf16>,
    return
  }
  func.func @transform_0(%arg0: i32) -> (i32, i32) {
    %c0_i32 = arith.constant 0 : i32
    %c0_i32_0 = arith.constant 0 : i32
    return %arg0, %c0_i32 : i32, i32
  }
  func.func @transform_1(%arg0: i32) -> (i32, i32) {
    %c0_i32 = arith.constant 0 : i32
    %c0_i32_0 = arith.constant 0 : i32
    %c0_i32_1 = arith.constant 0 : i32
    return %c0_i32, %c0_i32_0 : i32, i32
  }
  func.func @transform_2(%arg0: i32) -> (i32, i32, i32) {
    %c0_i32 = arith.constant 0 : i32
    %c0_i32_0 = arith.constant 0 : i32
    %c0_i32_1 = arith.constant 0 : i32
    %c0_i32_2 = arith.constant 0 : i32
    return %c0_i32, %c0_i32_0, %c0_i32_1 : i32, i32, i32
  }
  func.func @transform_3(%arg0: i32) -> (i32, i32, i32) {
    %c0_i32 = arith.constant 0 : i32
    %c0_i32_0 = arith.constant 0 : i32
    %c0_i32_1 = arith.constant 0 : i32
    %c0_i32_2 = arith.constant 0 : i32
    return %c0_i32, %c0_i32_0, %c0_i32_1 : i32, i32, i32
  }
  func.func @transform_4(%arg0: i32) -> (i32, i32, i32) {
    %c0_i32 = arith.constant 0 : i32
    %c0_i32_0 = arith.constant 0 : i32
    %c0_i32_1 = arith.constant 0 : i32
    %c0_i32_2 = arith.constant 0 : i32
    return %c0_i32, %c0_i32_0, %c0_i32_1 : i32, i32, i32
  }
  func.func @transform_5(%arg0: i32) -> (i32, i32) {
    %c0_i32 = arith.constant 0 : i32
    %c0_i32_0 = arith.constant 0 : i32
    return %arg0, %c0_i32 : i32, i32
  }
}

</mosaic_0001>

<bundles_post_ra>
// kernel: tpu_custom_call.1
= control target key start
LH: loop header
LB: loop body
LE: loop exit
PB: predicated region body
PF: predicated region fallthrough
CT: control target
= control target key end

     0   :  { %10 = vsyncpa [#allocation3], 0  ;;  %s1371_s0 = inlined_call_operand.hbm [shape: bf16[16,128], index: 0, kind: input, shape index: {}]   ;;  %s1372_s1 = inlined_call_operand.vmem [shape: f32[1,128], index: 1, kind: input, shape index: {}]   ;;  %s1373_s2 = inlined_call_operand.hbm [shape: f32[2,1,640], index: 2, kind: input, shape index: {}]   ;;  %s1374_s3 = inlined_call_operand.hbm [shape: bf16[2,128,256], index: 3, kind: input, shape index: {}]   ;;  %s1375_s4 = inlined_call_operand.hbm [shape: bf16[2,256,128], index: 4, kind: input, shape index: {}]   ;;  %s1376_s5 = inlined_call_operand.hbm [shape: bf16[16,128], index: 5, kind: output, shape index: {}]  }
   0x1   :  { %11 = vsyncpa [#allocation6], 0 }
   0x2   :  { %12 = vsyncpa [#allocation9], 0 }
   0x3   :  { %13 = vsyncpa [#allocation4], 0  ;;  %s1254_s18 = smov [#allocation5]  }
   0x4   :  { %s33_s19 = sshll.u32 %s1254_s18, 4  ;;  %s34_s19 = int_to_ptr.vmem [resolvable:$true] %s33_s19 }
   0x5   :  { %s1154_s20 = scalar_lea.vmem %s34_s19, 160  ;;  %p1159_p1 = scmp.lt.s32.totalorder %s34_s19, %s34_s19 }
   0x6   :  { %p1155_p0 = scmp.ne.s32.totalorder %s34_s19, %s1154_s20  ;;  %p1160_p2 = scmp.lt.s32.totalorder %s1154_s20, %s1154_s20 }
   0x8   :  { %p1161_p3 = por %p1160_p2, %p1159_p1 }
   0xa   :  { %p1162_p4 = pnand %p1161_p3, %p1155_p0 }
   0xc   :  { %1165 = shalt.err (!%p1162_p4)
}
   0xd   :  { %s1255_s21 = smov 80   ;;  %s1256_s22 = smov 5  }
   0xe   :  { %39 = dma.hbm_to_vmem [thread:$0]  %s1373_s2, 160, %s34_s19, [#allocation6], %s1255_s21, %s1255_s21, %s1256_s22  }
   0xf   :  { %s1257_s25 = smov [#allocation2]  }
  0x10   :  { %s19_s26 = sshll.u32 %s1257_s25, 4  ;;  %s20_s26 = int_to_ptr.vmem [resolvable:$true] %s19_s26 }
  0x11   :  { %s1174_s27 = scalar_lea.vmem %s20_s26, 128  ;;  %p1179_p6 = scmp.lt.s32.totalorder %s20_s26, %s20_s26 }
  0x12   :  { %p1175_p5 = scmp.ne.s32.totalorder %s20_s26, %s1174_s27  ;;  %p1180_p7 = scmp.lt.s32.totalorder %s1174_s27, %s1174_s27 }
  0x14   :  { %p1181_p8 = por %p1180_p7, %p1179_p6 }
  0x16   :  { %p1182_p9 = pnand %p1181_p8, %p1175_p5 }
  0x18   :  { %1185 = shalt.err (!%p1182_p9)
}
  0x19   :  { %s1258_s28 = smov 64   ;;  %s1259_s29 = smov 4  }
  0x1a   :  { %25 = dma.hbm_to_vmem [thread:$0]  %s1371_s0, 128, %s20_s26, [#allocation3], %s1258_s28, %s1258_s28, %s1259_s29  }
  0x1b   :  { %s1260_s2 = smov [#allocation7]  }
  0x1c   :  { %s45_s7 = sshll.u32 %s1260_s2, 4  ;;  %s46_s7 = int_to_ptr.vmem [resolvable:$true] %s45_s7 }
  0x1d   :  { %s1194_s8 = scalar_lea.vmem %s46_s7, 4096  ;;  %p1199_p11 = scmp.lt.s32.totalorder %s46_s7, %s46_s7 }
  0x1e   :  { %p1195_p10 = scmp.ne.s32.totalorder %s46_s7, %s1194_s8  ;;  %p1200_p12 = scmp.lt.s32.totalorder %s1194_s8, %s1194_s8 }
  0x20   :  { %p1201_p13 = por %p1200_p12, %p1199_p11 }
  0x22   :  { %p1202_p0 = pnand %p1201_p13, %p1195_p10 }
  0x24   :  { %1205 = shalt.err (!%p1202_p0)
}
  0x25   :  { %s1261_s9 = smov 128   ;;  %s1262_s10 = smov 8  }
  0x26   :  { %51 = dma.hbm_to_vmem [thread:$0]  %s1374_s3, 4096, %s46_s7, [#allocation6], %s1261_s9, %s1261_s9, %s1262_s10  }
  0x27   :  { %s1263_s13 = smov [#allocation8]  }
  0x28   :  { %s57_s14 = sshll.u32 %s1263_s13, 4  ;;  %s58_s14 = int_to_ptr.vmem [resolvable:$true] %s57_s14 }
  0x29   :  { %s1214_s0 = scalar_lea.vmem %s58_s14, 4096  ;;  %p1219_p2 = scmp.lt.s32.totalorder %s58_s14, %s58_s14 }
  0x2a   :  { %p1215_p1 = scmp.ne.s32.totalorder %s58_s14, %s1214_s0  ;;  %p1220_p3 = scmp.lt.s32.totalorder %s1214_s0, %s1214_s0 }
  0x2c   :  { %p1221_p4 = por %p1220_p3, %p1219_p2 }
  0x2e   :  { %p1222_p5 = pnand %p1221_p4, %p1215_p1 }
  0x30   :  { %1225 = shalt.err (!%p1222_p5)
}
  0x31   :  { %63 = dma.hbm_to_vmem [thread:$0]  %s1375_s4, 4096, %s58_s14, [#allocation9], %s1258_s28, %s1258_s28, %s1259_s29  }
  0x32   :  { %1246 = dma.done.wait [#allocation3], 128  }
  0x33   :  { %1247 = vsyncadd [#allocation3], 4294967168 }
  0x34   :  { %1248 = dma.done.wait [#allocation6], 4256  }
  0x35   :  { %1249 = vsyncadd [#allocation6], 4294963040 }
  0x36   :  { %1250 = dma.done.wait [#allocation9], 4096  }
  0x37   :  { %1251 = vsyncadd [#allocation9], 4294963200  ;;  %v986_v0 = vld [vmem:[#allocation2] sm:$0xff]   ;;  %v1055_v8 = vld [vmem:[#allocation7 + $0x60] ss:$8 sps:$4 sm:$0xff]   ;;  %v1264_v16 = vmov 0  }
  0x38   :  { %v1314_v1 = vunpack.c.l.bf16 %v986_v0  ;;  %v1316_v2 = vunpack.c.h.bf16 %v986_v0  ;;  %v1050_v5 = vld [vmem:[#allocation7 + $0x74] ss:$8 sps:$4 sm:$0xff]   ;;  %v1052_v6 = vld [vmem:[#allocation7 + $0x70] ss:$8 sps:$4 sm:$0xff]   ;;  %v1053_v7 = vld [vmem:[#allocation7 + $0x64] ss:$8 sps:$4 sm:$0xff]   ;;  %294 = vmatprep.mubr.bf16.mxu0 %v1264_v16 }
  0x39   :  { %262 = vmatprep.subr.bf16.mxu0 %v1050_v5  ;;  %v1056_v9 = vld [vmem:[#allocation7 + $0x54] ss:$8 sps:$4 sm:$0xff]   ;;  %v1058_v10 = vld [vmem:[#allocation7 + $0x50] ss:$8 sps:$4 sm:$0xff]   ;;  %v1059_v11 = vld [vmem:[#allocation7 + $0x44] ss:$8 sps:$4 sm:$0xff]   ;;  %v172_v5 = vlaneseq }
  0x3a   :  { %110 = vadd.xlane.f32.xlu0 %v1314_v1  ;;  %v116_v3 = vmul.f32 %v1314_v1, %v1314_v1  ;;  %v117_v4 = vmul.f32 %v1316_v2, %v1316_v2  ;;  %263 = vmatpush1.bf16.msra.mxu0 %v1052_v6  ;;  %v1061_v12 = vld [vmem:[#allocation7 + $0x40] ss:$8 sps:$4 sm:$0xff]   ;;  %v1062_v13 = vld [vmem:[#allocation7 + $0x34] ss:$8 sps:$4 sm:$0xff]   ;;  %v1064_v14 = vld [vmem:[#allocation7 + $0x30] ss:$8 sps:$4 sm:$0xff]  }
  0x3b   :  { %264 = vmatprep.subr.bf16.mxu0 %v1053_v7  ;;  %v1065_v15 = vld [vmem:[#allocation7 + $0x24] ss:$8 sps:$4 sm:$0xff]   ;;  %v1067_v17 = vld [vmem:[#allocation7 + $0x20] ss:$8 sps:$4 sm:$0xff]   ;;  %v1068_v18 = vld [vmem:[#allocation7 + $0x14] ss:$8 sps:$4 sm:$0xff]  }
  0x3c   :  { %118 = vadd.xlane.f32.xlu1 %v116_v3  ;;  %v1070_v19 = vld [vmem:[#allocation7 + $0x10] ss:$8 sps:$4 sm:$0xff]   ;;  %v1071_v20 = vld [vmem:[#allocation7 + $0x4] ss:$8 sps:$4 sm:$0xff]   ;;  %v1073_v21 = vld [vmem:[#allocation7] ss:$8 sps:$4 sm:$0xff]  }
  0x3d   :  { %v1074_v22 = vld [vmem:[#allocation8 + $0x78] sm:$0xff]   ;;  %v1076_v24 = vld [vmem:[#allocation8 + $0x70] sm:$0xff]   ;;  %v1078_v26 = vld [vmem:[#allocation8 + $0x68] sm:$0xff]   ;;  %v1328_v6 = vshrl.u32 %v172_v5, 7 }
  0x3e   :  { %112 = vadd.xlane.f32.xlu0 %v1316_v2  ;;  %265 = vmatpush1.bf16.msra.mxu0 %v1055_v8  ;;  %v1075_v23 = vld [vmem:[#allocation8 + $0x38] sm:$0xff]   ;;  %v1077_v25 = vld [vmem:[#allocation8 + $0x30] sm:$0xff]   ;;  %v1079_v27 = vld [vmem:[#allocation8 + $0x28] sm:$0xff]  }
  0x3f   :  { %266 = vmatprep.subr.bf16.mxu0 %v1056_v9  ;;  %994 = vmatprep.subr.bf16.mxu1 %v1074_v22  ;;  %v1080_v28 = vld [vmem:[#allocation8 + $0x60] sm:$0xff]   ;;  %v1082_v30 = vld [vmem:[#allocation8 + $0x58] sm:$0xff]   ;;  %v911_v51 = vld [vmem:[#allocation5] ss:$0 sm:$0xff]  ;;  %v178_v7 = vsub.s32 1, %v1328_v6  ;;  %v174_v8 = vsub.s32 0, %v1328_v6 }
  0x40   :  { %120 = vadd.xlane.f32.xlu1 %v117_v4  ;;  %995 = vmatpush3.bf16.msra.mxu1 %v1075_v23  ;;  %v1081_v29 = vld [vmem:[#allocation8 + $0x20] sm:$0xff]   ;;  %v1083_v31 = vld [vmem:[#allocation8 + $0x18] sm:$0xff]   ;;  %v912_v56 = vld [vmem:[#allocation5 + $0x1] ss:$0 sm:$0xff] }
  0x41   :  { %996 = vmatprep.subr.bf16.mxu1 %v1076_v24  ;;  %v1084_v61 = vld [vmem:[#allocation8 + $0x50] sm:$0xff]   ;;  %v1086_v63 = vld [vmem:[#allocation8 + $0x48] sm:$0xff]   ;;  %v1088_v3 = vld [vmem:[#allocation8 + $0x40] sm:$0xff]  }
  0x42   :  { %267 = vmatpush1.bf16.msra.mxu0 %v1058_v10  ;;  %v1085_v62 = vld [vmem:[#allocation8 + $0x10] sm:$0xff]   ;;  %v1087_v0 = vld [vmem:[#allocation8 + $0x8] sm:$0xff]   ;;  %v1089_v4 = vld [vmem:[#allocation8] sm:$0xff]  }
  0x43   :  { %268 = vmatprep.subr.bf16.mxu0 %v1059_v11  ;;  %v108_v9 = vld [vmem:[#allocation5 + $0x2] sm:$0x3] }
  0x44   :  { %997 = vmatpush3.bf16.msra.mxu1 %v1077_v25  ;;  %v179_v11 = vrot.slane %v108_v9, %v178_v7 }
  0x45   :  { %998 = vmatprep.subr.bf16.mxu1 %v1078_v26 }
  0x46   :  { %269 = vmatpush1.bf16.msra.mxu0 %v1061_v12  ;;  %v175_v12 = vrot.slane %v108_v9, %v174_v8 }
  0x47   :  { %270 = vmatprep.subr.bf16.mxu0 %v1062_v13 }
  0x48   :  { %999 = vmatpush3.bf16.msra.mxu1 %v1079_v27  ;;  %v929_v27 = vld [vmem:[#allocation5 + $0x4] ss:$0 sm:$0xff] }
  0x49   :  { %1000 = vmatprep.subr.bf16.mxu1 %v1080_v28 }
  0x4a   :  { %271 = vmatpush1.bf16.msra.mxu0 %v1064_v14 }
  0x4b   :  { %272 = vmatprep.subr.bf16.mxu0 %v1065_v15 }
  0x4c   :  { %1001 = vmatpush3.bf16.msra.mxu1 %v1081_v29 }
  0x4d   :  { %1002 = vmatprep.subr.bf16.mxu1 %v1082_v30 }
  0x4e   :  { %273 = vmatpush1.bf16.msra.mxu0 %v1067_v17 }
  0x4f   :  { %274 = vmatprep.subr.bf16.mxu0 %v1068_v18 }
  0x50   :  { %1003 = vmatpush3.bf16.msra.mxu1 %v1083_v31 }
  0x51   :  { %1004 = vmatprep.subr.bf16.mxu1 %v1084_v61  ;;  %v1120_v61 = vld [vmem:[#allocation8 + $0xe0] sm:$0xff]  }
  0x52   :  { %275 = vmatpush1.bf16.msra.mxu0 %v1070_v19 }
  0x53   :  { %276 = vmatprep.subr.bf16.mxu0 %v1071_v20 }
  0x54   :  { %1005 = vmatpush3.bf16.msra.mxu1 %v1085_v62  ;;  %v1121_v62 = vld [vmem:[#allocation8 + $0xa0] sm:$0xff]  }
  0x55   :  { %1006 = vmatprep.subr.bf16.mxu1 %v1086_v63  ;;  %v1122_v63 = vld [vmem:[#allocation8 + $0xd8] sm:$0xff]  }
  0x56   :  { %277 = vmatpush1.bf16.msra.mxu0 %v1073_v21 }
  0x58   :  { %1007 = vmatpush3.bf16.msra.mxu1 %v1087_v0  ;;  %v1123_v0 = vld [vmem:[#allocation8 + $0x98] sm:$0xff]  }
  0x59   :  { %1008 = vmatprep.subr.bf16.mxu1 %v1088_v3 }
  0x5c   :  { %1009 = vmatpush3.bf16.msra.mxu1 %v1089_v4 }
  0xc3   :  { %v111_v32 = vpop.xlane.xlu0 %110 }
  0xc4   :  { %v114_v33 = vmul.f32 0.0078125, %v111_v32 }
  0xc5   :  { %v119_v34 = vpop.xlane.xlu1 %118 }
  0xc6   :  { %v124_v35 = vmul.f32 %v114_v33, %v114_v33  ;;  %v122_v36 = vmul.f32 0.0078125, %v119_v34  ;;  %v130_v48 = vsub.f32 %v1314_v1, %v114_v33 }
  0xc7   :  { %v113_v37 = vpop.xlane.xlu0 %112 }
  0xc8   :  { %v126_v38 = vsub.f32 %v122_v36, %v124_v35  ;;  %v115_v39 = vmul.f32 0.0078125, %v113_v37 }
  0xc9   :  { %v121_v40 = vpop.xlane.xlu1 %120 }
  0xca   :  { %v128_v41 = vmax.f32 %v126_v38, 0.0  ;;  %v125_v42 = vmul.f32 %v115_v39, %v115_v39  ;;  %v123_v43 = vmul.f32 0.0078125, %v121_v40  ;;  %v131_v52 = vsub.f32 %v1316_v2, %v115_v39  ;;  %v1092_v39 = vld [vmem:[#allocation7 + $0xf4] ss:$8 sps:$4 sm:$0xff]   ;;  %v1090_v40 = vld [vmem:[#allocation7 + $0xf0] ss:$8 sps:$4 sm:$0xff]  }
  0xcb   :  { %646 = vmatprep.subr.bf16.mxu0 %v1092_v39  ;;  %v1126_v39 = vld [vmem:[#allocation8 + $0xc8] sm:$0xff]  }
  0xcc   :  { %v132_v44 = vadd.f32 1e-05, %v128_v41  ;;  %v127_v45 = vsub.f32 %v123_v43, %v125_v42  ;;  %v1095_v41 = vld [vmem:[#allocation7 + $0xe4] ss:$8 sps:$4 sm:$0xff]   ;;  %v1093_v42 = vld [vmem:[#allocation7 + $0xe0] ss:$8 sps:$4 sm:$0xff]  }
  0xcd   :  { %v1098_v43 = vld [vmem:[#allocation7 + $0xd4] ss:$8 sps:$4 sm:$0xff]  }
  0xce   :  { %1130 = vrsqrt.f32 %v132_v44  ;;  %v129_v46 = vmax.f32 %v127_v45, 0.0  ;;  %v1096_v44 = vld [vmem:[#allocation7 + $0xd0] ss:$8 sps:$4 sm:$0xff]   ;;  %v1099_v45 = vld [vmem:[#allocation7 + $0xc0] ss:$8 sps:$4 sm:$0xff]  }
  0xd0   :  { %v133_v47 = vadd.f32 1e-05, %v129_v46  ;;  %v1101_v46 = vld [vmem:[#allocation7 + $0xc4] ss:$8 sps:$4 sm:$0xff]  }
  0xd2   :  { %1132 = vrsqrt.f32 %v133_v47  ;;  %v1104_v47 = vld [vmem:[#allocation7 + $0xb4] ss:$8 sps:$4 sm:$0xff]  }
  0xdb   :  { %v1131_v49 = vpop.eup %1130 }
  0xdc   :  { %v136_v50 = vmul.f32 %v1131_v49, %v130_v48  ;;  %v1102_v48 = vld [vmem:[#allocation7 + $0xb0] ss:$8 sps:$4 sm:$0xff]   ;;  %v1107_v49 = vld [vmem:[#allocation7 + $0xa4] ss:$8 sps:$4 sm:$0xff]  }
  0xde   :  { %v144_v55 = vmul.f32 %v911_v51, %v136_v50  ;;  %v1105_v50 = vld [vmem:[#allocation7 + $0xa0] ss:$8 sps:$4 sm:$0xff]  }
  0xdf   :  { %v1133_v53 = vpop.eup %1132 }
  0xe0   :  { %v137_v54 = vmul.f32 %v1133_v53, %v131_v52  ;;  %v152_v58 = vadd.f32 %v912_v56, %v144_v55  ;;  %v1108_v52 = vld [vmem:[#allocation7 + $0x90] ss:$8 sps:$4 sm:$0xff]   ;;  %v1113_v53 = vld [vmem:[#allocation7 + $0x84] ss:$8 sps:$4 sm:$0xff]  }
  0xe1   :  { %v1114_v55 = vld [vmem:[#allocation8 + $0xf8] sm:$0xff]  }
  0xe2   :  { %v145_v57 = vmul.f32 %v911_v51, %v137_v54  ;;  %v1110_v51 = vld [vmem:[#allocation7 + $0x94] ss:$8 sps:$4 sm:$0xff]   ;;  %v1111_v54 = vld [vmem:[#allocation7 + $0x80] ss:$8 sps:$4 sm:$0xff]   ;;  %1016 = vmatprep.subr.bf16.mxu1 %v1114_v55 }
  0xe4   :  { %v153_v59 = vadd.f32 %v912_v56, %v145_v57  ;;  %v1115_v56 = vld [vmem:[#allocation8 + $0xb8] sm:$0xff]   ;;  %v1116_v57 = vld [vmem:[#allocation8 + $0xf0] sm:$0xff]  }
  0xe6   :  { %v154_v60 = vpack.c.bf16 %v153_v59, %v152_v58  ;;  %v1117_v58 = vld [vmem:[#allocation8 + $0xb0] sm:$0xff]   ;;  %v1118_v59 = vld [vmem:[#allocation8 + $0xe8] sm:$0xff]  }
  0xe8   :  { %295 = vmatmul.mubr.bf16.vlgmr.msra.gmra.mxu0 %v154_v60  ;;  %v1119_v60 = vld [vmem:[#allocation8 + $0xa8] sm:$0xff]  }
  0xe9   :  { %678 = vmatprep.mubr.bf16.mxu0 %v1264_v16  ;;  %647 = vmatpush1.bf16.msra.mxu0 %v1090_v40  ;;  %v1127_v40 = vld [vmem:[#allocation8 + $0x88] sm:$0xff]  }
  0xea   :  { %648 = vmatprep.subr.bf16.mxu0 %v1095_v41  ;;  %v1128_v41 = vld [vmem:[#allocation8 + $0xc0] sm:$0xff]  }
  0xed   :  { %649 = vmatpush1.bf16.msra.mxu0 %v1093_v42  ;;  %v1129_v42 = vld [vmem:[#allocation8 + $0x80] sm:$0xff]  }
  0xee   :  { %650 = vmatprep.subr.bf16.mxu0 %v1098_v43  ;;  %v908_v43 = vld [vmem:[%s1372_s1] ss:$0 sm:$0xff]  ;;  %s1265_s1 = smov [#allocation10]  }
  0xef   :  { %s894_s17 = sshll.u32 %s1265_s1, 4  ;;  %s895_s17 = int_to_ptr.vmem [resolvable:$true] %s894_s17 }
  0xf0   :  { %s1226_s18 = scalar_lea.vmem %s895_s17, 128  ;;  %p1231_p7 = scmp.lt.s32.totalorder %s895_s17, %s895_s17 }
  0xf1   :  { %651 = vmatpush1.bf16.msra.mxu0 %v1096_v44  ;;  %v88_v44 = vmul.f32 %v1314_v1, %v908_v43  ;;  %p1227_p6 = scmp.ne.s32.totalorder %s895_s17, %s1226_s18  ;;  %p1232_p8 = scmp.lt.s32.totalorder %s1226_s18, %s1226_s18 }
  0xf2   :  { %652 = vmatprep.subr.bf16.mxu0 %v1101_v46  ;;  %v491_v46 = vld [vmem:[#allocation5 + $0x7] sm:$0x3] }
  0xf3   :  { %p1233_p9 = por %p1232_p8, %p1231_p7 }
  0xf5   :  { %653 = vmatpush1.bf16.msra.mxu0 %v1099_v45  ;;  %v89_v45 = vmul.f32 %v1316_v2, %v908_v43  ;;  %p1234_p10 = pnand %p1233_p9, %p1227_p6 }
  0xf6   :  { %654 = vmatprep.subr.bf16.mxu0 %v1104_v47 }
  0xf9   :  { %655 = vmatpush1.bf16.msra.mxu0 %v1102_v48  ;;  %v563_v48 = vrot.slane %v491_v46, %v178_v7 }
  0xfa   :  { %656 = vmatprep.subr.bf16.mxu0 %v1107_v49  ;;  %v559_v49 = vrot.slane %v491_v46, %v174_v8 }
  0xfd   :  { %657 = vmatpush1.bf16.msra.mxu0 %v1105_v50 }
  0xfe   :  { %658 = vmatprep.subr.bf16.mxu0 %v1110_v51 }
 0x101   :  { %659 = vmatpush1.bf16.msra.mxu0 %v1108_v52 }
 0x102   :  { %660 = vmatprep.subr.bf16.mxu0 %v1113_v53 }
 0x105   :  { %661 = vmatpush1.bf16.msra.mxu0 %v1111_v54 }
 0x1a8   :  { %v296_v10 = vpop.f32.mrf.mxu0 }
 0x1a9   :  { %v297_v17 = vadd.f32 %v296_v10, %v175_v12 }
 0x1aa   :  { %v298_v13 = vpop.f32.mrf.mxu0 }
 0x1ab   :  { %v299_v15 = vadd.f32 %v298_v13, %v179_v11  ;;  %v305_v23 = vmax.f32 %v297_v17, 0.0 }
 0x1ac   :  { %v300_v14 = vpop.f32.mrf.mxu0 }
 0x1ad   :  { %v301_v16 = vadd.f32 %v300_v14, %v175_v12  ;;  %v306_v21 = vmax.f32 %v299_v15, 0.0 }
 0x1ae   :  { %v302_v18 = vpop.f32.mrf.mxu0 }
 0x1af   :  { %v303_v19 = vadd.f32 %v302_v18, %v179_v11  ;;  %v307_v20 = vmax.f32 %v301_v16, 0.0 }
 0x1b1   :  { %v308_v22 = vmax.f32 %v303_v19, 0.0  ;;  %v309_v25 = vpack.c.bf16 %v307_v20, %v305_v23 }
 0x1b3   :  { %v310_v24 = vpack.c.bf16 %v308_v22, %v306_v21 }
 0x1b5   :  { %477 = vmatprep.mubr.bf16.mxu1 %v310_v24 }
 0x1b6   :  { %478 = vmatmul.mubr.bf16.vlgmr.msra.gmra.mxu1 %v309_v25  ;;  %v946_v25 = vld [vmem:[#allocation5 + $0x5] ss:$0 sm:$0xff] }
 0x1b7   :  { %1017 = vmatpush3.bf16.msra.mxu1 %v1115_v56 }
 0x1b8   :  { %1018 = vmatprep.subr.bf16.mxu1 %v1116_v57 }
 0x1bb   :  { %1019 = vmatpush3.bf16.msra.mxu1 %v1117_v58 }
 0x1bc   :  { %1020 = vmatprep.subr.bf16.mxu1 %v1118_v59 }
 0x1bf   :  { %1021 = vmatpush3.bf16.msra.mxu1 %v1119_v60 }
 0x1c0   :  { %1022 = vmatprep.subr.bf16.mxu1 %v1120_v61 }
 0x1c3   :  { %1023 = vmatpush3.bf16.msra.mxu1 %v1121_v62 }
 0x1c4   :  { %1024 = vmatprep.subr.bf16.mxu1 %v1122_v63 }
 0x1c7   :  { %1025 = vmatpush3.bf16.msra.mxu1 %v1123_v0 }
 0x276   :  { %v1010_v26 = vpop.f32.mrf.mxu1 }
 0x278   :  { %v1011_v28 = vpop.f32.mrf.mxu1 }
 0x279   :  { %v1012_v29 = vadd.f32 %v1011_v28, %v1010_v26 }
 0x27a   :  { %v1013_v30 = vpop.f32.mrf.mxu1 }
 0x27b   :  { %v480_v31 = vadd.f32 %v1012_v29, %v929_v27 }
 0x27c   :  { %v1014_v32 = vpop.f32.mrf.mxu1 }
 0x27d   :  { %v1337_v33 = vadd.f32 %v1314_v1, %v480_v31  ;;  %v1015_v34 = vadd.f32 %v1014_v32, %v1013_v30  ;;  %v947_v30 = vld [vmem:[#allocation5 + $0x6] ss:$0 sm:$0xff] }
 0x27f   :  { %v483_v35 = vadd.f32 %v1015_v34, %v929_v27  ;;  %493 = vadd.xlane.f32.xlu0 %v1337_v33  ;;  %v499_v37 = vmul.f32 %v1337_v33, %v1337_v33 }
 0x281   :  { %v1341_v36 = vadd.f32 %v1316_v2, %v483_v35 }
 0x283   :  { %495 = vadd.xlane.f32.xlu1 %v1341_v36  ;;  %501 = vadd.xlane.f32.xlu0 %v499_v37  ;;  %v500_v38 = vmul.f32 %v1341_v36, %v1341_v36  ;;  %v1124_v37 = vld [vmem:[#allocation8 + $0xd0] sm:$0xff]  }
 0x284   :  { %1026 = vmatprep.subr.bf16.mxu1 %v1124_v37 }
 0x287   :  { %503 = vadd.xlane.f32.xlu1 %v500_v38  ;;  %v1125_v38 = vld [vmem:[#allocation8 + $0x90] sm:$0xff]   ;;  %90 = vadd.xlane.f32.xlu0 %v88_v44 }
 0x288   :  { %1027 = vmatpush3.bf16.msra.mxu1 %v1125_v38 }
 0x289   :  { %1028 = vmatprep.subr.bf16.mxu1 %v1126_v39 }
 0x28b   :  { %92 = vadd.xlane.f32.xlu1 %v89_v45 }
 0x28c   :  { %1029 = vmatpush3.bf16.msra.mxu1 %v1127_v40 }
 0x28d   :  { %1030 = vmatprep.subr.bf16.mxu1 %v1128_v41 }
 0x290   :  { %1031 = vmatpush3.bf16.msra.mxu1 %v1129_v42 }
 0x308   :  { %v494_v3 = vpop.xlane.xlu0 %493 }
 0x309   :  { %v497_v4 = vmul.f32 0.0078125, %v494_v3 }
 0x30b   :  { %v507_v10 = vmul.f32 %v497_v4, %v497_v4  ;;  %v513_v22 = vsub.f32 %v1337_v33, %v497_v4 }
 0x30c   :  { %v496_v5 = vpop.xlane.xlu1 %495  ;;  %v502_v9 = vpop.xlane.xlu0 %501 }
 0x30d   :  { %v498_v11 = vmul.f32 0.0078125, %v496_v5  ;;  %v505_v12 = vmul.f32 0.0078125, %v502_v9 }
 0x30f   :  { %v509_v13 = vsub.f32 %v505_v12, %v507_v10  ;;  %v508_v15 = vmul.f32 %v498_v11, %v498_v11  ;;  %v514_v26 = vsub.f32 %v1341_v36, %v498_v11  ;;  %v964_v10 = vld [vmem:[#allocation5 + $0x9] ss:$0 sm:$0xff] }
 0x310   :  { %v504_v14 = vpop.xlane.xlu1 %503  ;;  %v91_v63 = vpop.xlane.xlu0 %90 }
 0x311   :  { %v511_v16 = vmax.f32 %v509_v13, 0.0  ;;  %v506_v17 = vmul.f32 0.0078125, %v504_v14  ;;  %v909_v0 = vmul.f32 -1.442695, %v91_v63 }
 0x313   :  { %v515_v18 = vadd.f32 1e-05, %v511_v16  ;;  %v510_v19 = vsub.f32 %v506_v17, %v508_v15 }
 0x314   :  { %v93_v7 = vpop.xlane.xlu1 %92 }
 0x315   :  { %1134 = vrsqrt.f32 %v515_v18  ;;  %v512_v20 = vmax.f32 %v510_v19, 0.0  ;;  %v910_v6 = vmul.f32 -1.442695, %v93_v7 }
 0x317   :  { %v516_v21 = vadd.f32 1e-05, %v512_v20 }
 0x319   :  { %1136 = vrsqrt.f32 %v516_v21 }
 0x31a   :  { %1138 = vpow2.f32 %v909_v0 }
 0x31b   :  { %1140 = vpow2.f32 %v910_v6 }
 0x322   :  { %v1135_v23 = vpop.eup %1134 }
 0x323   :  { %v519_v24 = vmul.f32 %v1135_v23, %v513_v22 }
 0x325   :  { %v527_v29 = vmul.f32 %v946_v25, %v519_v24 }
 0x326   :  { %v1137_v27 = vpop.eup %1136 }
 0x327   :  { %v520_v28 = vmul.f32 %v1137_v27, %v514_v26  ;;  %v535_v32 = vadd.f32 %v947_v30, %v527_v29  ;;  %v1139_v8 = vpop.eup %1138 }
 0x328   :  { %v1141_v3 = vpop.eup %1140  ;;  %v100_v4 = vadd.f32 1.0, %v1139_v8 }
 0x329   :  { %v528_v31 = vmul.f32 %v946_v25, %v520_v28  ;;  %v101_v5 = vadd.f32 1.0, %v1141_v3 }
 0x32a   :  { %1142 = vrcp.f32 %v100_v4 }
 0x32b   :  { %v536_v34 = vadd.f32 %v947_v30, %v528_v31  ;;  %1144 = vrcp.f32 %v101_v5 }
 0x32d   :  { %v537_v35 = vpack.c.bf16 %v536_v34, %v535_v32 }
 0x32f   :  { %679 = vmatmul.mubr.bf16.vlgmr.msra.gmra.mxu0 %v537_v35 }
 0x337   :  { %v1143_v20 = vpop.eup %1142 }
 0x338   :  { %v1145_v22 = vpop.eup %1144 }
 0x3ef   :  { %v680_v47 = vpop.f32.mrf.mxu0 }
 0x3f0   :  { %v681_v54 = vadd.f32 %v680_v47, %v559_v49 }
 0x3f1   :  { %v682_v50 = vpop.f32.mrf.mxu0 }
 0x3f2   :  { %v683_v52 = vadd.f32 %v682_v50, %v563_v48  ;;  %v689_v60 = vmax.f32 %v681_v54, 0.0 }
 0x3f3   :  { %v684_v51 = vpop.f32.mrf.mxu0 }
 0x3f4   :  { %v685_v53 = vadd.f32 %v684_v51, %v559_v49  ;;  %v690_v58 = vmax.f32 %v683_v52, 0.0 }
 0x3f5   :  { %v686_v55 = vpop.f32.mrf.mxu0 }
 0x3f6   :  { %v687_v56 = vadd.f32 %v686_v55, %v563_v48  ;;  %v691_v57 = vmax.f32 %v685_v53, 0.0 }
 0x3f8   :  { %v692_v59 = vmax.f32 %v687_v56, 0.0  ;;  %v693_v62 = vpack.c.bf16 %v691_v57, %v689_v60 }
 0x3fa   :  { %v694_v61 = vpack.c.bf16 %v692_v59, %v690_v58 }
 0x3fc   :  { %862 = vmatprep.mubr.bf16.mxu1 %v694_v61 }
 0x3fd   :  { %863 = vmatmul.mubr.bf16.vlgmr.msra.gmra.mxu1 %v693_v62 }
 0x4bd   :  { %v1032_v9 = vpop.f32.mrf.mxu1 }
 0x4bf   :  { %v1033_v11 = vpop.f32.mrf.mxu1 }
 0x4c0   :  { %v1034_v12 = vadd.f32 %v1033_v11, %v1032_v9 }
 0x4c1   :  { %v1035_v13 = vpop.f32.mrf.mxu1 }
 0x4c2   :  { %v865_v14 = vadd.f32 %v1034_v12, %v964_v10 }
 0x4c3   :  { %v1036_v15 = vpop.f32.mrf.mxu1 }
 0x4c4   :  { %v871_v16 = vadd.f32 %v865_v14, %v1337_v33  ;;  %v1037_v17 = vadd.f32 %v1036_v15, %v1035_v13 }
 0x4c6   :  { %v873_v18 = vsub.f32 %v871_v16, %v1314_v1  ;;  %v868_v19 = vadd.f32 %v1037_v17, %v964_v10 }
 0x4c8   :  { %v872_v21 = vadd.f32 %v868_v19, %v1341_v36  ;;  %v875_v24 = vmul.f32 %v1143_v20, %v873_v18 }
 0x4ca   :  { %v874_v23 = vsub.f32 %v872_v21, %v1316_v2  ;;  %v877_v26 = vadd.f32 %v1314_v1, %v875_v24 }
 0x4cc   :  { %v876_v25 = vmul.f32 %v1145_v22, %v874_v23 }
 0x4ce   :  { %v878_v27 = vadd.f32 %v1316_v2, %v876_v25 }
 0x4d0   :  { %v992_v28 = vpack.c.bf16 %v878_v27, %v877_v26 }
 0x4d2   :  { %993 = vst [vmem:[#allocation10] sm:$0xff] %v992_v28  }
 0x4d3   :  { %1237 = shalt.err (!%p1234_p10)
}
 0x4d4   :  { %900 = dma.vmem_to_hbm [thread:$0]  %s895_s17, 128, %s1376_s5, [#allocation4], %s1258_s28, %s1258_s28, %s1259_s29  }
 0x4d5   :  { %1252 = dma.done.wait [#allocation4], 128  }
 0x4d6   :  { %1253 = vsyncadd [#allocation4], 4294967168 }
 0x4d7   :  { %904 = vsyncpa [#allocation3], 1 }
 0x4d8   :  { %905 = vsyncpa [#allocation6], 1 }
 0x4d9   :  { %906 = vsyncpa [#allocation9], 1 }
 0x4da   :  { %907 = vsyncpa [#allocation4], 1 }

// kernel: tpu_custom_call.1
= control target key start
LH: loop header
LB: loop body
LE: loop exit
PB: predicated region body
PF: predicated region fallthrough
CT: control target
= control target key end

     0   :  { %10 = vsyncpa [#allocation3], 0  ;;  %s1371_s0 = inlined_call_operand.hbm [shape: bf16[16,128], index: 0, kind: input, shape index: {}]   ;;  %s1372_s1 = inlined_call_operand.vmem [shape: f32[1,128], index: 1, kind: input, shape index: {}]   ;;  %s1373_s2 = inlined_call_operand.hbm [shape: f32[2,1,640], index: 2, kind: input, shape index: {}]   ;;  %s1374_s3 = inlined_call_operand.hbm [shape: bf16[2,128,256], index: 3, kind: input, shape index: {}]   ;;  %s1375_s4 = inlined_call_operand.hbm [shape: bf16[2,256,128], index: 4, kind: input, shape index: {}]   ;;  %s1376_s5 = inlined_call_operand.hbm [shape: bf16[16,128], index: 5, kind: output, shape index: {}]  }
   0x1   :  { %11 = vsyncpa [#allocation6], 0 }
   0x2   :  { %12 = vsyncpa [#allocation9], 0 }
   0x3   :  { %13 = vsyncpa [#allocation4], 0  ;;  %s1254_s18 = smov [#allocation5]  }
   0x4   :  { %s33_s19 = sshll.u32 %s1254_s18, 4  ;;  %s34_s19 = int_to_ptr.vmem [resolvable:$true] %s33_s19 }
   0x5   :  { %s1154_s20 = scalar_lea.vmem %s34_s19, 160  ;;  %p1159_p1 = scmp.lt.s32.totalorder %s34_s19, %s34_s19 }
   0x6   :  { %p1155_p0 = scmp.ne.s32.totalorder %s34_s19, %s1154_s20  ;;  %p1160_p2 = scmp.lt.s32.totalorder %s1154_s20, %s1154_s20 }
   0x8   :  { %p1161_p3 = por %p1160_p2, %p1159_p1 }
   0xa   :  { %p1162_p4 = pnand %p1161_p3, %p1155_p0 }
   0xc   :  { %1165 = shalt.err (!%p1162_p4)
}
   0xd   :  { %s1255_s21 = smov 80   ;;  %s1256_s22 = smov 5  }
   0xe   :  { %39 = dma.hbm_to_vmem [thread:$0]  %s1373_s2, 160, %s34_s19, [#allocation6], %s1255_s21, %s1255_s21, %s1256_s22  }
   0xf   :  { %s1257_s25 = smov [#allocation2]  }
  0x10   :  { %s19_s26 = sshll.u32 %s1257_s25, 4  ;;  %s20_s26 = int_to_ptr.vmem [resolvable:$true] %s19_s26 }
  0x11   :  { %s1174_s27 = scalar_lea.vmem %s20_s26, 128  ;;  %p1179_p6 = scmp.lt.s32.totalorder %s20_s26, %s20_s26 }
  0x12   :  { %p1175_p5 = scmp.ne.s32.totalorder %s20_s26, %s1174_s27  ;;  %p1180_p7 = scmp.lt.s32.totalorder %s1174_s27, %s1174_s27 }
  0x14   :  { %p1181_p8 = por %p1180_p7, %p1179_p6 }
  0x16   :  { %p1182_p9 = pnand %p1181_p8, %p1175_p5 }
  0x18   :  { %1185 = shalt.err (!%p1182_p9)
}
  0x19   :  { %s1258_s28 = smov 64   ;;  %s1259_s29 = smov 4  }
  0x1a   :  { %25 = dma.hbm_to_vmem [thread:$0]  %s1371_s0, 128, %s20_s26, [#allocation3], %s1258_s28, %s1258_s28, %s1259_s29  }
  0x1b   :  { %s1260_s2 = smov [#allocation7]  }
  0x1c   :  { %s45_s7 = sshll.u32 %s1260_s2, 4  ;;  %s46_s7 = int_to_ptr.vmem [resolvable:$true] %s45_s7 }
  0x1d   :  { %s1194_s8 = scalar_lea.vmem %s46_s7, 4096  ;;  %p1199_p11 = scmp.lt.s32.totalorder %s46_s7, %s46_s7 }
  0x1e   :  { %p1195_p10 = scmp.ne.s32.totalorder %s46_s7, %s1194_s8  ;;  %p1200_p12 = scmp.lt.s32.totalorder %s1194_s8, %s1194_s8 }
  0x20   :  { %p1201_p13 = por %p1200_p12, %p1199_p11 }
  0x22   :  { %p1202_p0 = pnand %p1201_p13, %p1195_p10 }
  0x24   :  { %1205 = shalt.err (!%p1202_p0)
}
  0x25   :  { %s1261_s9 = smov 128   ;;  %s1262_s10 = smov 8  }
  0x26   :  { %51 = dma.hbm_to_vmem [thread:$0]  %s1374_s3, 4096, %s46_s7, [#allocation6], %s1261_s9, %s1261_s9, %s1262_s10  }
  0x27   :  { %s1263_s13 = smov [#allocation8]  }
  0x28   :  { %s57_s14 = sshll.u32 %s1263_s13, 4  ;;  %s58_s14 = int_to_ptr.vmem [resolvable:$true] %s57_s14 }
  0x29   :  { %s1214_s0 = scalar_lea.vmem %s58_s14, 4096  ;;  %p1219_p2 = scmp.lt.s32.totalorder %s58_s14, %s58_s14 }
  0x2a   :  { %p1215_p1 = scmp.ne.s32.totalorder %s58_s14, %s1214_s0  ;;  %p1220_p3 = scmp.lt.s32.totalorder %s1214_s0, %s1214_s0 }
  0x2c   :  { %p1221_p4 = por %p1220_p3, %p1219_p2 }
  0x2e   :  { %p1222_p5 = pnand %p1221_p4, %p1215_p1 }
  0x30   :  { %1225 = shalt.err (!%p1222_p5)
}
  0x31   :  { %63 = dma.hbm_to_vmem [thread:$0]  %s1375_s4, 4096, %s58_s14, [#allocation9], %s1258_s28, %s1258_s28, %s1259_s29  }
  0x32   :  { %1246 = dma.done.wait [#allocation3], 128  }
  0x33   :  { %1247 = vsyncadd [#allocation3], 4294967168 }
  0x34   :  { %1248 = dma.done.wait [#allocation6], 4256  }
  0x35   :  { %1249 = vsyncadd [#allocation6], 4294963040 }
  0x36   :  { %1250 = dma.done.wait [#allocation9], 4096  }
  0x37   :  { %1251 = vsyncadd [#allocation9], 4294963200  ;;  %v986_v0 = vld [vmem:[#allocation2] sm:$0xff]   ;;  %v1055_v8 = vld [vmem:[#allocation7 + $0x60] ss:$8 sps:$4 sm:$0xff]   ;;  %v1264_v16 = vmov 0  }
  0x38   :  { %v1314_v1 = vunpack.c.l.bf16 %v986_v0  ;;  %v1316_v2 = vunpack.c.h.bf16 %v986_v0  ;;  %v1050_v5 = vld [vmem:[#allocation7 + $0x74] ss:$8 sps:$4 sm:$0xff]   ;;  %v1052_v6 = vld [vmem:[#allocation7 + $0x70] ss:$8 sps:$4 sm:$0xff]   ;;  %v1053_v7 = vld [vmem:[#allocation7 + $0x64] ss:$8 sps:$4 sm:$0xff]   ;;  %294 = vmatprep.mubr.bf16.mxu0 %v1264_v16 }
  0x39   :  { %262 = vmatprep.subr.bf16.mxu0 %v1050_v5  ;;  %v1056_v9 = vld [vmem:[#allocation7 + $0x54] ss:$8 sps:$4 sm:$0xff]   ;;  %v1058_v10 = vld [vmem:[#allocation7 + $0x50] ss:$8 sps:$4 sm:$0xff]   ;;  %v1059_v11 = vld [vmem:[#allocation7 + $0x44] ss:$8 sps:$4 sm:$0xff]   ;;  %v172_v5 = vlaneseq }
  0x3a   :  { %110 = vadd.xlane.f32.xlu0 %v1314_v1  ;;  %v116_v3 = vmul.f32 %v1314_v1, %v1314_v1  ;;  %v117_v4 = vmul.f32 %v1316_v2, %v1316_v2  ;;  %263 = vmatpush1.bf16.msra.mxu0 %v1052_v6  ;;  %v1061_v12 = vld [vmem:[#allocation7 + $0x40] ss:$8 sps:$4 sm:$0xff]   ;;  %v1062_v13 = vld [vmem:[#allocation7 + $0x34] ss:$8 sps:$4 sm:$0xff]   ;;  %v1064_v14 = vld [vmem:[#allocation7 + $0x30] ss:$8 sps:$4 sm:$0xff]  }
  0x3b   :  { %264 = vmatprep.subr.bf16.mxu0 %v1053_v7  ;;  %v1065_v15 = vld [vmem:[#allocation7 + $0x24] ss:$8 sps:$4 sm:$0xff]   ;;  %v1067_v17 = vld [vmem:[#allocation7 + $0x20] ss:$8 sps:$4 sm:$0xff]   ;;  %v1068_v18 = vld [vmem:[#allocation7 + $0x14] ss:$8 sps:$4 sm:$0xff]  }
  0x3c   :  { %118 = vadd.xlane.f32.xlu1 %v116_v3  ;;  %v1070_v19 = vld [vmem:[#allocation7 + $0x10] ss:$8 sps:$4 sm:$0xff]   ;;  %v1071_v20 = vld [vmem:[#allocation7 + $0x4] ss:$8 sps:$4 sm:$0xff]   ;;  %v1073_v21 = vld [vmem:[#allocation7] ss:$8 sps:$4 sm:$0xff]  }
  0x3d   :  { %v1074_v22 = vld [vmem:[#allocation8 + $0x78] sm:$0xff]   ;;  %v1076_v24 = vld [vmem:[#allocation8 + $0x70] sm:$0xff]   ;;  %v1078_v26 = vld [vmem:[#allocation8 + $0x68] sm:$0xff]   ;;  %v1328_v6 = vshrl.u32 %v172_v5, 7 }
  0x3e   :  { %112 = vadd.xlane.f32.xlu0 %v1316_v2  ;;  %265 = vmatpush1.bf16.msra.mxu0 %v1055_v8  ;;  %v1075_v23 = vld [vmem:[#allocation8 + $0x38] sm:$0xff]   ;;  %v1077_v25 = vld [vmem:[#allocation8 + $0x30] sm:$0xff]   ;;  %v1079_v27 = vld [vmem:[#allocation8 + $0x28] sm:$0xff]  }
  0x3f   :  { %266 = vmatprep.subr.bf16.mxu0 %v1056_v9  ;;  %994 = vmatprep.subr.bf16.mxu1 %v1074_v22  ;;  %v1080_v28 = vld [vmem:[#allocation8 + $0x60] sm:$0xff]   ;;  %v1082_v30 = vld [vmem:[#allocation8 + $0x58] sm:$0xff]   ;;  %v911_v51 = vld [vmem:[#allocation5] ss:$0 sm:$0xff]  ;;  %v178_v7 = vsub.s32 1, %v1328_v6  ;;  %v174_v8 = vsub.s32 0, %v1328_v6 }
  0x40   :  { %120 = vadd.xlane.f32.xlu1 %v117_v4  ;;  %995 = vmatpush3.bf16.msra.mxu1 %v1075_v23  ;;  %v1081_v29 = vld [vmem:[#allocation8 + $0x20] sm:$0xff]   ;;  %v1083_v31 = vld [vmem:[#allocation8 + $0x18] sm:$0xff]   ;;  %v912_v56 = vld [vmem:[#allocation5 + $0x1] ss:$0 sm:$0xff] }
  0x41   :  { %996 = vmatprep.subr.bf16.mxu1 %v1076_v24  ;;  %v1084_v61 = vld [vmem:[#allocation8 + $0x50] sm:$0xff]   ;;  %v1086_v63 = vld [vmem:[#allocation8 + $0x48] sm:$0xff]   ;;  %v1088_v3 = vld [vmem:[#allocation8 + $0x40] sm:$0xff]  }
  0x42   :  { %267 = vmatpush1.bf16.msra.mxu0 %v1058_v10  ;;  %v1085_v62 = vld [vmem:[#allocation8 + $0x10] sm:$0xff]   ;;  %v1087_v0 = vld [vmem:[#allocation8 + $0x8] sm:$0xff]   ;;  %v1089_v4 = vld [vmem:[#allocation8] sm:$0xff]  }
  0x43   :  { %268 = vmatprep.subr.bf16.mxu0 %v1059_v11  ;;  %v108_v9 = vld [vmem:[#allocation5 + $0x2] sm:$0x3] }
  0x44   :  { %997 = vmatpush3.bf16.msra.mxu1 %v1077_v25  ;;  %v179_v11 = vrot.slane %v108_v9, %v178_v7 }
  0x45   :  { %998 = vmatprep.subr.bf16.mxu1 %v1078_v26 }
  0x46   :  { %269 = vmatpush1.bf16.msra.mxu0 %v1061_v12  ;;  %v175_v12 = vrot.slane %v108_v9, %v174_v8 }
  0x47   :  { %270 = vmatprep.subr.bf16.mxu0 %v1062_v13 }
  0x48   :  { %999 = vmatpush3.bf16.msra.mxu1 %v1079_v27  ;;  %v929_v27 = vld [vmem:[#allocation5 + $0x4] ss:$0 sm:$0xff] }
  0x49   :  { %1000 = vmatprep.subr.bf16.mxu1 %v1080_v28 }
  0x4a   :  { %271 = vmatpush1.bf16.msra.mxu0 %v1064_v14 }
  0x4b   :  { %272 = vmatprep.subr.bf16.mxu0 %v1065_v15 }
  0x4c   :  { %1001 = vmatpush3.bf16.msra.mxu1 %v1081_v29 }
  0x4d   :  { %1002 = vmatprep.subr.bf16.mxu1 %v1082_v30 }
  0x4e   :  { %273 = vmatpush1.bf16.msra.mxu0 %v1067_v17 }
  0x4f   :  { %274 = vmatprep.subr.bf16.mxu0 %v1068_v18 }
  0x50   :  { %1003 = vmatpush3.bf16.msra.mxu1 %v1083_v31 }
  0x51   :  { %1004 = vmatprep.subr.bf16.mxu1 %v1084_v61  ;;  %v1120_v61 = vld [vmem:[#allocation8 + $0xe0] sm:$0xff]  }
  0x52   :  { %275 = vmatpush1.bf16.msra.mxu0 %v1070_v19 }
  0x53   :  { %276 = vmatprep.subr.bf16.mxu0 %v1071_v20 }
  0x54   :  { %1005 = vmatpush3.bf16.msra.mxu1 %v1085_v62  ;;  %v1121_v62 = vld [vmem:[#allocation8 + $0xa0] sm:$0xff]  }
  0x55   :  { %1006 = vmatprep.subr.bf16.mxu1 %v1086_v63  ;;  %v1122_v63 = vld [vmem:[#allocation8 + $0xd8] sm:$0xff]  }
  0x56   :  { %277 = vmatpush1.bf16.msra.mxu0 %v1073_v21 }
  0x58   :  { %1007 = vmatpush3.bf16.msra.mxu1 %v1087_v0  ;;  %v1123_v0 = vld [vmem:[#allocation8 + $0x98] sm:$0xff]  }
  0x59   :  { %1008 = vmatprep.subr.bf16.mxu1 %v1088_v3 }
  0x5c   :  { %1009 = vmatpush3.bf16.msra.mxu1 %v1089_v4 }
  0xc3   :  { %v111_v32 = vpop.xlane.xlu0 %110 }
  0xc4   :  { %v114_v33 = vmul.f32 0.0078125, %v111_v32 }
  0xc5   :  { %v119_v34 = vpop.xlane.xlu1 %118 }
  0xc6   :  { %v124_v35 = vmul.f32 %v114_v33, %v114_v33  ;;  %v122_v36 = vmul.f32 0.0078125, %v119_v34  ;;  %v130_v48 = vsub.f32 %v1314_v1, %v114_v33 }
  0xc7   :  { %v113_v37 = vpop.xlane.xlu0 %112 }
  0xc8   :  { %v126_v38 = vsub.f32 %v122_v36, %v124_v35  ;;  %v115_v39 = vmul.f32 0.0078125, %v113_v37 }
  0xc9   :  { %v121_v40 = vpop.xlane.xlu1 %120 }
  0xca   :  { %v128_v41 = vmax.f32 %v126_v38, 0.0  ;;  %v125_v42 = vmul.f32 %v115_v39, %v115_v39  ;;  %v123_v43 = vmul.f32 0.0078125, %v121_v40  ;;  %v131_v52 = vsub.f32 %v1316_v2, %v115_v39  ;;  %v1092_v39 = vld [vmem:[#allocation7 + $0xf4] ss:$8 sps:$4 sm:$0xff]   ;;  %v1090_v40 = vld [vmem:[#allocation7 + $0xf0] ss:$8 sps:$4 sm:$0xff]  }
  0xcb   :  { %646 = vmatprep.subr.bf16.mxu0 %v1092_v39  ;;  %v1126_v39 = vld [vmem:[#allocation8 + $0xc8] sm:$0xff]  }
  0xcc   :  { %v132_v44 = vadd.f32 1e-05, %v128_v41  ;;  %v127_v45 = vsub.f32 %v123_v43, %v125_v42  ;;  %v1095_v41 = vld [vmem:[#allocation7 + $0xe4] ss:$8 sps:$4 sm:$0xff]   ;;  %v1093_v42 = vld [vmem:[#allocation7 + $0xe0] ss:$8 sps:$4 sm:$0xff]  }
  0xcd   :  { %v1098_v43 = vld [vmem:[#allocation7 + $0xd4] ss:$8 sps:$4 sm:$0xff]  }
  0xce   :  { %1130 = vrsqrt.f32 %v132_v44  ;;  %v129_v46 = vmax.f32 %v127_v45, 0.0  ;;  %v1096_v44 = vld [vmem:[#allocation7 + $0xd0] ss:$8 sps:$4 sm:$0xff]   ;;  %v1099_v45 = vld [vmem:[#allocation7 + $0xc0] ss:$8 sps:$4 sm:$0xff]  }
  0xd0   :  { %v133_v47 = vadd.f32 1e-05, %v129_v46  ;;  %v1101_v46 = vld [vmem:[#allocation7 + $0xc4] ss:$8 sps:$4 sm:$0xff]  }
  0xd2   :  { %1132 = vrsqrt.f32 %v133_v47  ;;  %v1104_v47 = vld [vmem:[#allocation7 + $0xb4] ss:$8 sps:$4 sm:$0xff]  }
  0xdb   :  { %v1131_v49 = vpop.eup %1130 }
  0xdc   :  { %v136_v50 = vmul.f32 %v1131_v49, %v130_v48  ;;  %v1102_v48 = vld [vmem:[#allocation7 + $0xb0] ss:$8 sps:$4 sm:$0xff]   ;;  %v1107_v49 = vld [vmem:[#allocation7 + $0xa4] ss:$8 sps:$4 sm:$0xff]  }
  0xde   :  { %v144_v55 = vmul.f32 %v911_v51, %v136_v50  ;;  %v1105_v50 = vld [vmem:[#allocation7 + $0xa0] ss:$8 sps:$4 sm:$0xff]  }
  0xdf   :  { %v1133_v53 = vpop.eup %1132 }
  0xe0   :  { %v137_v54 = vmul.f32 %v1133_v53, %v131_v52  ;;  %v152_v58 = vadd.f32 %v912_v56, %v144_v55  ;;  %v1108_v52 = vld [vmem:[#allocation7 + $0x90] ss:$8 sps:$4 sm:$0xff]   ;;  %v1113_v53 = vld [vmem:[#allocation7 + $0x84] ss:$8 sps:$4 sm:$0xff]  }
  0xe1   :  { %v1114_v55 = vld [vmem:[#allocation8 + $0xf8] sm:$0xff]  }
  0xe2   :  { %v145_v57 = vmul.f32 %v911_v51, %v137_v54  ;;  %v1110_v51 = vld [vmem:[#allocation7 + $0x94] ss:$8 sps:$4 sm:$0xff]   ;;  %v1111_v54 = vld [vmem:[#allocation7 + $0x80] ss:$8 sps:$4 sm:$0xff]   ;;  %1016 = vmatprep.subr.bf16.mxu1 %v1114_v55 }
  0xe4   :  { %v153_v59 = vadd.f32 %v912_v56, %v145_v57  ;;  %v1115_v56 = vld [vmem:[#allocation8 + $0xb8] sm:$0xff]   ;;  %v1116_v57 = vld [vmem:[#allocation8 + $0xf0] sm:$0xff]  }
  0xe6   :  { %v154_v60 = vpack.c.bf16 %v153_v59, %v152_v58  ;;  %v1117_v58 = vld [vmem:[#allocation8 + $0xb0] sm:$0xff]   ;;  %v1118_v59 = vld [vmem:[#allocation8 + $0xe8] sm:$0xff]  }
  0xe8   :  { %295 = vmatmul.mubr.bf16.vlgmr.msra.gmra.mxu0 %v154_v60  ;;  %v1119_v60 = vld [vmem:[#allocation8 + $0xa8] sm:$0xff]  }
  0xe9   :  { %678 = vmatprep.mubr.bf16.mxu0 %v1264_v16  ;;  %647 = vmatpush1.bf16.msra.mxu0 %v1090_v40  ;;  %v1127_v40 = vld [vmem:[#allocation8 + $0x88] sm:$0xff]  }
  0xea   :  { %648 = vmatprep.subr.bf16.mxu0 %v1095_v41  ;;  %v1128_v41 = vld [vmem:[#allocation8 + $0xc0] sm:$0xff]  }
  0xed   :  { %649 = vmatpush1.bf16.msra.mxu0 %v1093_v42  ;;  %v1129_v42 = vld [vmem:[#allocation8 + $0x80] sm:$0xff]  }
  0xee   :  { %650 = vmatprep.subr.bf16.mxu0 %v1098_v43  ;;  %v908_v43 = vld [vmem:[%s1372_s1] ss:$0 sm:$0xff]  ;;  %s1265_s1 = smov [#allocation10]  }
  0xef   :  { %s894_s17 = sshll.u32 %s1265_s1, 4  ;;  %s895_s17 = int_to_ptr.vmem [resolvable:$true] %s894_s17 }
  0xf0   :  { %s1226_s18 = scalar_lea.vmem %s895_s17, 128  ;;  %p1231_p7 = scmp.lt.s32.totalorder %s895_s17, %s895_s17 }
  0xf1   :  { %651 = vmatpush1.bf16.msra.mxu0 %v1096_v44  ;;  %v88_v44 = vmul.f32 %v1314_v1, %v908_v43  ;;  %p1227_p6 = scmp.ne.s32.totalorder %s895_s17, %s1226_s18  ;;  %p1232_p8 = scmp.lt.s32.totalorder %s1226_s18, %s1226_s18 }
  0xf2   :  { %652 = vmatprep.subr.bf16.mxu0 %v1101_v46  ;;  %v491_v46 = vld [vmem:[#allocation5 + $0x7] sm:$0x3] }
  0xf3   :  { %p1233_p9 = por %p1232_p8, %p1231_p7 }
  0xf5   :  { %653 = vmatpush1.bf16.msra.mxu0 %v1099_v45  ;;  %v89_v45 = vmul.f32 %v1316_v2, %v908_v43  ;;  %p1234_p10 = pnand %p1233_p9, %p1227_p6 }
  0xf6   :  { %654 = vmatprep.subr.bf16.mxu0 %v1104_v47 }
  0xf9   :  { %655 = vmatpush1.bf16.msra.mxu0 %v1102_v48  ;;  %v563_v48 = vrot.slane %v491_v46, %v178_v7 }
  0xfa   :  { %656 = vmatprep.subr.bf16.mxu0 %v1107_v49  ;;  %v559_v49 = vrot.slane %v491_v46, %v174_v8 }
  0xfd   :  { %657 = vmatpush1.bf16.msra.mxu0 %v1105_v50 }
  0xfe   :  { %658 = vmatprep.subr.bf16.mxu0 %v1110_v51 }
 0x101   :  { %659 = vmatpush1.bf16.msra.mxu0 %v1108_v52 }
 0x102   :  { %660 = vmatprep.subr.bf16.mxu0 %v1113_v53 }
 0x105   :  { %661 = vmatpush1.bf16.msra.mxu0 %v1111_v54 }
 0x1a8   :  { %v296_v10 = vpop.f32.mrf.mxu0 }
 0x1a9   :  { %v297_v17 = vadd.f32 %v296_v10, %v175_v12 }
 0x1aa   :  { %v298_v13 = vpop.f32.mrf.mxu0 }
 0x1ab   :  { %v299_v15 = vadd.f32 %v298_v13, %v179_v11  ;;  %v305_v23 = vmax.f32 %v297_v17, 0.0 }
 0x1ac   :  { %v300_v14 = vpop.f32.mrf.mxu0 }
 0x1ad   :  { %v301_v16 = vadd.f32 %v300_v14, %v175_v12  ;;  %v306_v21 = vmax.f32 %v299_v15, 0.0 }
 0x1ae   :  { %v302_v18 = vpop.f32.mrf.mxu0 }
 0x1af   :  { %v303_v19 = vadd.f32 %v302_v18, %v179_v11  ;;  %v307_v20 = vmax.f32 %v301_v16, 0.0 }
 0x1b1   :  { %v308_v22 = vmax.f32 %v303_v19, 0.0  ;;  %v309_v25 = vpack.c.bf16 %v307_v20, %v305_v23 }
 0x1b3   :  { %v310_v24 = vpack.c.bf16 %v308_v22, %v306_v21 }
 0x1b5   :  { %477 = vmatprep.mubr.bf16.mxu1 %v310_v24 }
 0x1b6   :  { %478 = vmatmul.mubr.bf16.vlgmr.msra.gmra.mxu1 %v309_v25  ;;  %v946_v25 = vld [vmem:[#allocation5 + $0x5] ss:$0 sm:$0xff] }
 0x1b7   :  { %1017 = vmatpush3.bf16.msra.mxu1 %v1115_v56 }
 0x1b8   :  { %1018 = vmatprep.subr.bf16.mxu1 %v1116_v57 }
 0x1bb   :  { %1019 = vmatpush3.bf16.msra.mxu1 %v1117_v58 }
 0x1bc   :  { %1020 = vmatprep.subr.bf16.mxu1 %v1118_v59 }
 0x1bf   :  { %1021 = vmatpush3.bf16.msra.mxu1 %v1119_v60 }
 0x1c0   :  { %1022 = vmatprep.subr.bf16.mxu1 %v1120_v61 }
 0x1c3   :  { %1023 = vmatpush3.bf16.msra.mxu1 %v1121_v62 }
 0x1c4   :  { %1024 = vmatprep.subr.bf16.mxu1 %v1122_v63 }
 0x1c7   :  { %1025 = vmatpush3.bf16.msra.mxu1 %v1123_v0 }
 0x276   :  { %v1010_v26 = vpop.f32.mrf.mxu1 }
 0x278   :  { %v1011_v28 = vpop.f32.mrf.mxu1 }
 0x279   :  { %v1012_v29 = vadd.f32 %v1011_v28, %v1010_v26 }
 0x27a   :  { %v1013_v30 = vpop.f32.mrf.mxu1 }
 0x27b   :  { %v480_v31 = vadd.f32 %v1012_v29, %v929_v27 }
 0x27c   :  { %v1014_v32 = vpop.f32.mrf.mxu1 }
 0x27d   :  { %v1337_v33 = vadd.f32 %v1314_v1, %v480_v31  ;;  %v1015_v34 = vadd.f32 %v1014_v32, %v1013_v30  ;;  %v947_v30 = vld [vmem:[#allocation5 + $0x6] ss:$0 sm:$0xff] }
 0x27f   :  { %v483_v35 = vadd.f32 %v1015_v34, %v929_v27  ;;  %493 = vadd.xlane.f32.xlu0 %v1337_v33  ;;  %v499_v37 = vmul.f32 %v1337_v33, %v1337_v33 }
 0x281   :  { %v1341_v36 = vadd.f32 %v1316_v2, %v483_v35 }
 0x283   :  { %495 = vadd.xlane.f32.xlu1 %v1341_v36  ;;  %501 = vadd.xlane.f32.xlu0 %v499_v37  ;;  %v500_v38 = vmul.f32 %v1341_v36, %v1341_v36  ;;  %v1124_v37 = vld [vmem:[#allocation8 + $0xd0] sm:$0xff]  }
 0x284   :  { %1026 = vmatprep.subr.bf16.mxu1 %v1124_v37 }
 0x287   :  { %503 = vadd.xlane.f32.xlu1 %v500_v38  ;;  %v1125_v38 = vld [vmem:[#allocation8 + $0x90] sm:$0xff]   ;;  %90 = vadd.xlane.f32.xlu0 %v88_v44 }
 0x288   :  { %1027 = vmatpush3.bf16.msra.mxu1 %v1125_v38 }
 0x289   :  { %1028 = vmatprep.subr.bf16.mxu1 %v1126_v39 }
 0x28b   :  { %92 = vadd.xlane.f32.xlu1 %v89_v45 }
 0x28c   :  { %1029 = vmatpush3.bf16.msra.mxu1 %v1127_v40 }
 0x28d   :  { %1030 = vmatprep.subr.bf16.mxu1 %v1128_v41 }
 0x290   :  { %1031 = vmatpush3.bf16.msra.mxu1 %v1129_v42 }
 0x308   :  { %v494_v3 = vpop.xlane.xlu0 %493 }
 0x309   :  { %v497_v4 = vmul.f32 0.0078125, %v494_v3 }
 0x30b   :  { %v507_v10 = vmul.f32 %v497_v4, %v497_v4  ;;  %v513_v22 = vsub.f32 %v1337_v33, %v497_v4 }
 0x30c   :  { %v496_v5 = vpop.xlane.xlu1 %495  ;;  %v502_v9 = vpop.xlane.xlu0 %501 }
 0x30d   :  { %v498_v11 = vmul.f32 0.0078125, %v496_v5  ;;  %v505_v12 = vmul.f32 0.0078125, %v502_v9 }
 0x30f   :  { %v509_v13 = vsub.f32 %v505_v12, %v507_v10  ;;  %v508_v15 = vmul.f32 %v498_v11, %v498_v11  ;;  %v514_v26 = vsub.f32 %v1341_v36, %v498_v11  ;;  %v964_v10 = vld [vmem:[#allocation5 + $0x9] ss:$0 sm:$0xff] }
 0x310   :  { %v504_v14 = vpop.xlane.xlu1 %503  ;;  %v91_v63 = vpop.xlane.xlu0 %90 }
 0x311   :  { %v511_v16 = vmax.f32 %v509_v13, 0.0  ;;  %v506_v17 = vmul.f32 0.0078125, %v504_v14  ;;  %v909_v0 = vmul.f32 -1.442695, %v91_v63 }
 0x313   :  { %v515_v18 = vadd.f32 1e-05, %v511_v16  ;;  %v510_v19 = vsub.f32 %v506_v17, %v508_v15 }
 0x314   :  { %v93_v7 = vpop.xlane.xlu1 %92 }
 0x315   :  { %1134 = vrsqrt.f32 %v515_v18  ;;  %v512_v20 = vmax.f32 %v510_v19, 0.0  ;;  %v910_v6 = vmul.f32 -1.442695, %v93_v7 }
 0x317   :  { %v516_v21 = vadd.f32 1e-05, %v512_v20 }
 0x319   :  { %1136 = vrsqrt.f32 %v516_v21 }
 0x31a   :  { %1138 = vpow2.f32 %v909_v0 }
 0x31b   :  { %1140 = vpow2.f32 %v910_v6 }
 0x322   :  { %v1135_v23 = vpop.eup %1134 }
 0x323   :  { %v519_v24 = vmul.f32 %v1135_v23, %v513_v22 }
 0x325   :  { %v527_v29 = vmul.f32 %v946_v25, %v519_v24 }
 0x326   :  { %v1137_v27 = vpop.eup %1136 }
 0x327   :  { %v520_v28 = vmul.f32 %v1137_v27, %v514_v26  ;;  %v535_v32 = vadd.f32 %v947_v30, %v527_v29  ;;  %v1139_v8 = vpop.eup %1138 }
 0x328   :  { %v1141_v3 = vpop.eup %1140  ;;  %v100_v4 = vadd.f32 1.0, %v1139_v8 }
 0x329   :  { %v528_v31 = vmul.f32 %v946_v25, %v520_v28  ;;  %v101_v5 = vadd.f32 1.0, %v1141_v3 }
 0x32a   :  { %1142 = vrcp.f32 %v100_v4 }
 0x32b   :  { %v536_v34 = vadd.f32 %v947_v30, %v528_v31  ;;  %1144 = vrcp.f32 %v101_v5 }
 0x32d   :  { %v537_v35 = vpack.c.bf16 %v536_v34, %v535_v32 }
 0x32f   :  { %679 = vmatmul.mubr.bf16.vlgmr.msra.gmra.mxu0 %v537_v35 }
 0x337   :  { %v1143_v20 = vpop.eup %1142 }
 0x338   :  { %v1145_v22 = vpop.eup %1144 }
 0x3ef   :  { %v680_v47 = vpop.f32.mrf.mxu0 }
 0x3f0   :  { %v681_v54 = vadd.f32 %v680_v47, %v559_v49 }
 0x3f1   :  { %v682_v50 = vpop.f32.mrf.mxu0 }
 0x3f2   :  { %v683_v52 = vadd.f32 %v682_v50, %v563_v48  ;;  %v689_v60 = vmax.f32 %v681_v54, 0.0 }
 0x3f3   :  { %v684_v51 = vpop.f32.mrf.mxu0 }
 0x3f4   :  { %v685_v53 = vadd.f32 %v684_v51, %v559_v49  ;;  %v690_v58 = vmax.f32 %v683_v52, 0.0 }
 0x3f5   :  { %v686_v55 = vpop.f32.mrf.mxu0 }
 0x3f6   :  { %v687_v56 = vadd.f32 %v686_v55, %v563_v48  ;;  %v691_v57 = vmax.f32 %v685_v53, 0.0 }
 0x3f8   :  { %v692_v59 = vmax.f32 %v687_v56, 0.0  ;;  %v693_v62 = vpack.c.bf16 %v691_v57, %v689_v60 }
 0x3fa   :  { %v694_v61 = vpack.c.bf16 %v692_v59, %v690_v58 }
 0x3fc   :  { %862 = vmatprep.mubr.bf16.mxu1 %v694_v61 }
 0x3fd   :  { %863 = vmatmul.mubr.bf16.vlgmr.msra.gmra.mxu1 %v693_v62 }
 0x4bd   :  { %v1032_v9 = vpop.f32.mrf.mxu1 }
 0x4bf   :  { %v1033_v11 = vpop.f32.mrf.mxu1 }
 0x4c0   :  { %v1034_v12 = vadd.f32 %v1033_v11, %v1032_v9 }
 0x4c1   :  { %v1035_v13 = vpop.f32.mrf.mxu1 }
 0x4c2   :  { %v865_v14 = vadd.f32 %v1034_v12, %v964_v10 }
 0x4c3   :  { %v1036_v15 = vpop.f32.mrf.mxu1 }
 0x4c4   :  { %v871_v16 = vadd.f32 %v865_v14, %v1337_v33  ;;  %v1037_v17 = vadd.f32 %v1036_v15, %v1035_v13 }
 0x4c6   :  { %v873_v18 = vsub.f32 %v871_v16, %v1314_v1  ;;  %v868_v19 = vadd.f32 %v1037_v17, %v964_v10 }
 0x4c8   :  { %v872_v21 = vadd.f32 %v868_v19, %v1341_v36  ;;  %v875_v24 = vmul.f32 %v1143_v20, %v873_v18 }
 0x4ca   :  { %v874_v23 = vsub.f32 %v872_v21, %v1316_v2  ;;  %v877_v26 = vadd.f32 %v1314_v1, %v875_v24 }
 0x4cc   :  { %v876_v25 = vmul.f32 %v1145_v22, %v874_v23 }
 0x4ce   :  { %v878_v27 = vadd.f32 %v1316_v2, %v876_v25 }
 0x4d0   :  { %v992_v28 = vpack.c.bf16 %v878_v27, %v877_v26 }
 0x4d2   :  { %993 = vst [vmem:[#allocation10] sm:$0xff] %v992_v28  }
 0x4d3   :  { %1237 = shalt.err (!%p1234_p10)
}
 0x4d4   :  { %900 = dma.vmem_to_hbm [thread:$0]  %s895_s17, 128, %s1376_s5, [#allocation4], %s1258_s28, %s1258_s28, %s1259_s29  }
 0x4d5   :  { %1252 = dma.done.wait [#allocation4], 128  }
 0x4d6   :  { %1253 = vsyncadd [#allocation4], 4294967168 }
 0x4d7   :  { %904 = vsyncpa [#allocation3], 1 }
 0x4d8   :  { %905 = vsyncpa [#allocation6], 1 }
 0x4d9   :  { %906 = vsyncpa [#allocation9], 1 }
 0x4da   :  { %907 = vsyncpa [#allocation4], 1 }

</bundles_post_ra>
